<compile_context>
chip_gen: v7x
topology: tpu7x:2x2x1
jax: 0.10.0
libtpu: 0.0.40
codegen_flags: <defaults>
</compile_context>

<pallas_src>
import functools

import jax
import jax.numpy as jnp
import numpy as np
from jax.experimental import pallas as pl
from jax.experimental.pallas import tpu as pltpu


def _textcnn_kernel(L, H,
                    emb_ref, wpack_ref, wqk_ref, wfc_ref, b4_ref, bfc_ref,
                    out_ref):
    R, _ = emb_ref.shape            # R = Bt * L token rows (batch-major)
    Bt = out_ref.shape[0]
    K = b4_ref.shape[1]
    hd = K // H
    f32 = jnp.float32

    # ---- packed conv: one lane-dense (R, D) @ (D, 6K) bf16 MXU matmul ------
    # wpack columns: [c2 tap0 | c2 tap1 | c4 tap0 | c4 tap1 | c4 tap2 | c4 tap3]
    y = jnp.dot(emb_ref[...], wpack_ref[...],
                preferred_element_type=f32)                        # (R, 6K) f32
    ypad = jnp.concatenate([y, jnp.zeros((8, 6 * K), f32)], axis=0)

    def tap(r, j):   # tap r (rows shifted forward by r), channel group j
        return ypad[r:r + R, j * K:(j + 1) * K]                    # (R, K)

    s2 = tap(0, 0) + tap(1, 1)                                     # conv ks=2
    s4 = tap(0, 2) + tap(1, 3) + tap(2, 4) + tap(3, 5)             # conv ks=4

    # Bias + ReLU, then zero the invalid tail positions of every sequence
    # (safe for the max-pool: ReLU outputs are >= 0 and every sequence has at
    # least one valid position).
    t_idx = jax.lax.broadcasted_iota(jnp.int32, (L, 1), 0)
    t_idx = jnp.concatenate([t_idx] * Bt, axis=0)                  # (R, 1)
    relu2 = jnp.where(t_idx < (L - 1),
                      jnp.maximum(s2 + b4_ref[0:1, :], 0.0), 0.0)
    relu4 = jnp.where(t_idx < (L - 3),
                      jnp.maximum(s4 + b4_ref[1:2, :], 0.0), 0.0)
    rcat = jnp.concatenate([relu2, relu4], axis=1)                 # (R, 2K)

    # Global max-pool over time, per sequence.  Small unrolled loop keeps the
    # reduction as plain 2-D sublane reduces (robust Mosaic lowering).
    pooled = jnp.concatenate(
        [jnp.max(rcat[b * L:(b + 1) * L, :], axis=0, keepdims=True)
         for b in range(Bt)], axis=0)                              # (Bt, 2K)
    p2 = pooled[:, 0:K]
    p4 = pooled[:, K:2 * K]

    # ---- MHSA over the two pooled "tokens", all Bt rows fused --------------
    feat = jnp.concatenate([p2, p4], axis=0)                       # (2Bt, K)
    qk = jnp.dot(feat, wqk_ref[...], preferred_element_type=f32)   # (2Bt, 2K)
    q = qk[:, 0:K] + b4_ref[2:3, :]
    k = qk[:, K:2 * K] + b4_ref[3:4, :]
    q0, q1 = q[0:Bt], q[Bt:2 * Bt]
    k0, k1 = k[0:Bt], k[Bt:2 * Bt]

    # channel -> head one-hot grouping matrices, built in-register.
    ch = jax.lax.broadcasted_iota(jnp.int32, (K, H), 0)
    hh = jax.lax.broadcasted_iota(jnp.int32, (K, H), 1)
    g = ((ch >= hh * hd) & (ch < (hh + 1) * hd)).astype(f32)       # (K, H)
    hh2 = jax.lax.broadcasted_iota(jnp.int32, (H, K), 0)
    ch2 = jax.lax.broadcasted_iota(jnp.int32, (H, K), 1)
    gt = ((ch2 >= hh2 * hd) & (ch2 < (hh2 + 1) * hd)).astype(f32)  # (H, K)

    scale = float(K) ** -0.5
    prod = jnp.concatenate([q0 * k0, q0 * k1, q1 * k0, q1 * k1], axis=0)
    s = jnp.dot(prod, g, preferred_element_type=f32) * scale       # (4Bt, H)
    s00, s01 = s[0:Bt], s[Bt:2 * Bt]
    s10, s11 = s[2 * Bt:3 * Bt], s[3 * Bt:4 * Bt]

    def softmax2(a, b):        # softmax over the two key positions
        m = jnp.maximum(a, b)
        ea = jnp.exp(a - m)
        eb = jnp.exp(b - m)
        inv = 1.0 / (ea + eb)
        return ea * inv, eb * inv

    a00, a01 = softmax2(s00, s01)
    a10, a11 = softmax2(s10, s11)
    attn = jnp.concatenate([a00, a01, a10, a11], axis=0)           # (4Bt, H)
    e = jnp.dot(attn, gt, preferred_element_type=f32)              # (4Bt, K)
    e00, e01 = e[0:Bt], e[Bt:2 * Bt]
    e10, e11 = e[2 * Bt:3 * Bt], e[3 * Bt:4 * Bt]

    # v = k (faithful to the reference module's quirk), residual, fc.
    o0 = e00 * k0 + e01 * k1 + p2
    o1 = e10 * k0 + e11 * k1 + p4
    res = jnp.concatenate([o0, o1], axis=1)                        # (Bt, 2K)
    out_ref[...] = (jnp.dot(res, wfc_ref[...], preferred_element_type=f32)
                    + bfc_ref[...])


def textcnn_forward(tokens, params, *, num_heads=10, batch_tile=16):
    emb_table = params["embedding"]
    B, L = tokens.shape
    D = emb_table.shape[1]
    K = params["conv2_w"].shape[0]
    C = params["fc_w"].shape[0]
    H = num_heads
    assert K % H == 0 and L >= 4

    # Batch tile: multiple of 8 (output block sublane rule).
    Bt = max(8, (min(batch_tile, B) // 8) * 8)
    Bp = pl.cdiv(B, Bt) * Bt
    if Bp != B:
        tokens = jnp.pad(tokens, ((0, Bp - B), (0, 0)))

    # ---- plain-JAX glue: bf16 embedding gather + weight packing ------------
    # TODO(synk): the embedding lookup is a data-dependent HBM gather; kept in
    # JAX/XLA rather than inside the kernel.
    emb = jnp.take(emb_table.astype(jnp.bfloat16),
                   tokens.reshape(-1), axis=0)                     # (Bp*L, D) bf16

    w2 = params["conv2_w"][:, 0, :, :]                             # (K, 2, D)
    w4 = params["conv4_w"][:, 0, :, :]                             # (K, 4, D)
    wpack = jnp.concatenate(
        [w2[:, 0, :].T, w2[:, 1, :].T,
         w4[:, 0, :].T, w4[:, 1, :].T, w4[:, 2, :].T, w4[:, 3, :].T],
        axis=1).astype(jnp.bfloat16)                               # (D, 6K)
    wqk = jnp.concatenate([params["q_w"].T, params["k_w"].T], axis=1)  # (K, 2K)
    wfc = params["fc_w"].T                                         # (2K, C)
    b4 = jnp.stack([params["conv2_b"], params["conv4_b"],
                    params["q_b"], params["k_b"]], axis=0)         # (4, K)
    bfc = params["fc_b"].reshape(1, C)

    kern = functools.partial(_textcnn_kernel, L, H)
    grid_spec = pltpu.PrefetchScalarGridSpec(
        num_scalar_prefetch=0,
        grid=(Bp // Bt,),
        in_specs=[
            pl.BlockSpec((Bt * L, D), lambda g: (g, 0)),   # embeddings (streamed)
            pl.BlockSpec((D, 6 * K), lambda g: (0, 0)),    # packed conv weight
            pl.BlockSpec((K, 2 * K), lambda g: (0, 0)),    # [Wq^T | Wk^T]
            pl.BlockSpec((2 * K, C), lambda g: (0, 0)),    # fc weight^T
            pl.BlockSpec((4, K),     lambda g: (0, 0)),    # biases b2/b4/bq/bk
            pl.BlockSpec((1, C),     lambda g: (0, 0)),    # fc bias
        ],
        out_specs=pl.BlockSpec((Bt, C), lambda g: (g, 0)),
    )
    out = pl.pallas_call(
        kern,
        out_shape=jax.ShapeDtypeStruct((Bp, C), jnp.float32),
        grid_spec=grid_spec,
        compiler_params=pltpu.CompilerParams(
            dimension_semantics=("parallel",)),
    )(emb, wpack, wqk, wfc, b4, bfc)
    return out[:B]


def textcnn_reference(tokens, params, *, num_heads=10):
    """Pure-JAX reference mirroring the PyTorch forward (eval mode)."""
    emb = jnp.take(params["embedding"], tokens, axis=0)             # (B,L,D)
    x = emb[:, None, :, :]                                          # (B,1,L,D)
    feats = []
    for name, ks in (("conv2", 2), ("conv4", 4)):
        w = params[f"{name}_w"]                                     # (K,1,ks,D)
        b = params[f"{name}_b"]
        out = jax.lax.conv_general_dilated(
            x, w, window_strides=(1, 1), padding="VALID",
            dimension_numbers=("NCHW", "OIHW", "NCHW"),
            precision=jax.lax.Precision.HIGHEST)                    # (B,K,T,1)
        out = jax.nn.relu(out + b[None, :, None, None])[..., 0]     # (B,K,T)
        feats.append(jnp.max(out, axis=2)[:, None, :])              # (B,1,K)
    xcat = jnp.concatenate(feats, axis=1)                           # (B,2,K)
    o = xcat.reshape(xcat.shape[0], -1)

    B, N, Cc = xcat.shape
    H = num_heads
    hd = Cc // H
    q = xcat @ params["q_w"].T + params["q_b"]
    k = xcat @ params["k_w"].T + params["k_b"]
    v = k                                                           # module quirk
    qh = q.reshape(B, N, H, hd).transpose(0, 2, 1, 3)
    kh = k.reshape(B, N, H, hd).transpose(0, 2, 1, 3)
    vh = v.reshape(B, N, H, hd).transpose(0, 2, 1, 3)
    attn = (qh @ jnp.swapaxes(kh, 2, 3)) * (Cc ** -0.5)
    attn = jax.nn.softmax(attn, axis=-1)
    mh = (attn @ vh).transpose(0, 2, 1, 3).reshape(B, N, Cc)
    logit = mh.reshape(B, -1) + o
    return logit @ params["fc_w"].T + params["fc_b"]


def init_params(key, *, vocab=30522, embed_dim=200, kernel_num=20, num_classes=3):
    ks = jax.random.split(key, 10)
    u = lambda k, shape, s: jax.random.uniform(k, shape, jnp.float32, -s, s)
    return dict(
        embedding=u(ks[0], (vocab, embed_dim), 0.2),
        conv2_w=u(ks[1], (kernel_num, 1, 2, embed_dim), 0.05),
        conv2_b=u(ks[2], (kernel_num,), 0.05),
        conv4_w=u(ks[3], (kernel_num, 1, 4, embed_dim), 0.05),
        conv4_b=u(ks[4], (kernel_num,), 0.05),
        q_w=u(ks[5], (kernel_num, kernel_num), 0.2),
        q_b=u(ks[6], (kernel_num,), 0.2),
        k_w=u(ks[7], (kernel_num, kernel_num), 0.2),
        k_b=u(ks[8], (kernel_num,), 0.2),
        # MHSA.v linear exists in __init__ but is never used in forward().
        fc_w=u(ks[9], (num_classes, 2 * kernel_num), 0.2),
        fc_b=jnp.zeros((num_classes,), jnp.float32),
    )


if __name__ == "__main__":
    key = jax.random.PRNGKey(0)
    kp, kx = jax.random.split(key)

    VOCAB = 30522        # pretraining_model != 'roberta-base' (bert vocab)
    B, L = 32, 16
    KERNEL_NUM = 20      # must be divisible by num_heads=10
    NUM_CLASSES = 3

    params = init_params(kp, vocab=VOCAB, embed_dim=200,
                         kernel_num=KERNEL_NUM, num_classes=NUM_CLASSES)
    tokens = jax.random.randint(kx, (B, L), 0, VOCAB, dtype=jnp.int32)

    out = textcnn_forward(tokens, params, num_heads=10, batch_tile=16)
    out = jax.block_until_ready(out)

    # Reference uses the same bf16 rounding of the embedding table and conv
    # weights that the kernel uses, so only accumulation order differs.
    params_ref = dict(params)
    for name in ("embedding", "conv2_w", "conv4_w"):
        params_ref[name] = params[name].astype(jnp.bfloat16).astype(jnp.float32)
    with jax.default_matmul_precision("highest"):
        ref = textcnn_reference(tokens, params_ref)
        ref = jax.block_until_ready(ref)

    np.testing.assert_allclose(np.asarray(out), np.asarray(ref),
                               rtol=1e-3, atol=1e-3)
    print("KERNEL_OK")
</pallas_src>

<mosaic_0001>
module attributes {stable_mosaic.version = 11 : i64} {
  func.func @_textcnn_kernel(%arg0: i32, %arg1: memref<256x200xbf16, #tpu.memory_space<vmem>>, %arg2: memref<200x120xbf16, #tpu.memory_space<vmem>>, %arg3: memref<20x40xf32, #tpu.memory_space<vmem>>, %arg4: memref<40x3xf32, #tpu.memory_space<vmem>>, %arg5: memref<4x20xf32, #tpu.memory_space<vmem>>, %arg6: memref<1x3xf32, #tpu.memory_space<vmem>>, %arg7: memref<16x3xf32, #tpu.memory_space<vmem>>) attributes {dimension_semantics = [#tpu.dimension_semantics<parallel>], iteration_bounds = array<i64: 2>, scalar_prefetch = 0 : i64, scratch_operands = 0 : i64, tpu.core_type = #tpu.core_type<tc>, window_params = [{transform_indices = @transform_0, window_bounds = array<i64: 256, 200>}, {pipeline_mode = #tpu.pipeline_mode<synchronous>, transform_indices = @transform_1, window_bounds = array<i64: 200, 120>}, {pipeline_mode = #tpu.pipeline_mode<synchronous>, transform_indices = @transform_2, window_bounds = array<i64: 20, 40>}, {pipeline_mode = #tpu.pipeline_mode<synchronous>, transform_indices = @transform_3, window_bounds = array<i64: 40, 3>}, {pipeline_mode = #tpu.pipeline_mode<synchronous>, transform_indices = @transform_4, window_bounds = array<i64: 4, 20>}, {pipeline_mode = #tpu.pipeline_mode<synchronous>, transform_indices = @transform_5, window_bounds = array<i64: 1, 3>}, {transform_indices = @transform_6, window_bounds = array<i64: 16, 3>}]} {
    %c0 = arith.constant 0 : index
    %c0_0 = arith.constant 0 : index
    %0 = vector.load %arg1[%c0, %c0_0] : memref<256x200xbf16, #tpu.memory_space<vmem>>, vector<256x200xbf16>
    %c0_1 = arith.constant 0 : index
    %c0_2 = arith.constant 0 : index
    %1 = vector.load %arg2[%c0_1, %c0_2] : memref<200x120xbf16, #tpu.memory_space<vmem>>, vector<200x120xbf16>
    %cst = arith.constant dense<0.000000e+00> : vector<256x120xf32>
    %2 = tpu.matmul %0, %1, %cst {dimension_numbers = #tpu.dot_dimension_numbers<[1], [0], [0], [1], [0, 0, 1, 1], [], []>} : vector<256x200xbf16>, vector<200x120xbf16>, vector<256x120xf32> -> vector<256x120xf32>
    %cst_3 = arith.constant 0.000000e+00 : f32
    %3 = vector.broadcast %cst_3 : f32 to vector<8x120xf32>
    %4 = tpu.concatenate %2, %3 in 0 : vector<256x120xf32>, vector<8x120xf32> -> vector<264x120xf32>
    %5 = vector.extract_strided_slice %4 {offsets = [0, 0], sizes = [256, 20], strides = [1, 1]} : vector<264x120xf32> to vector<256x20xf32>
    %6 = vector.extract_strided_slice %4 {offsets = [1, 20], sizes = [256, 20], strides = [1, 1]} : vector<264x120xf32> to vector<256x20xf32>
    %7 = arith.addf %5, %6 : vector<256x20xf32>
    %8 = vector.extract_strided_slice %4 {offsets = [0, 40], sizes = [256, 20], strides = [1, 1]} : vector<264x120xf32> to vector<256x20xf32>
    %9 = vector.extract_strided_slice %4 {offsets = [1, 60], sizes = [256, 20], strides = [1, 1]} : vector<264x120xf32> to vector<256x20xf32>
    %10 = arith.addf %8, %9 : vector<256x20xf32>
    %11 = vector.extract_strided_slice %4 {offsets = [2, 80], sizes = [256, 20], strides = [1, 1]} : vector<264x120xf32> to vector<256x20xf32>
    %12 = arith.addf %10, %11 : vector<256x20xf32>
    %13 = vector.extract_strided_slice %4 {offsets = [3, 100], sizes = [256, 20], strides = [1, 1]} : vector<264x120xf32> to vector<256x20xf32>
    %14 = arith.addf %12, %13 : vector<256x20xf32>
    %15 = tpu.iota {dimensions = array<i32: 0>} : vector<16x1xi32>
    %16 = tpu.concatenate %15, %15, %15, %15, %15, %15, %15, %15, %15, %15, %15, %15, %15, %15, %15, %15 in 0 : vector<16x1xi32>, vector<16x1xi32>, vector<16x1xi32>, vector<16x1xi32>, vector<16x1xi32>, vector<16x1xi32>, vector<16x1xi32>, vector<16x1xi32>, vector<16x1xi32>, vector<16x1xi32>, vector<16x1xi32>, vector<16x1xi32>, vector<16x1xi32>, vector<16x1xi32>, vector<16x1xi32>, vector<16x1xi32> -> vector<256x1xi32>
    %c15_i32 = arith.constant 15 : i32
    %17 = vector.broadcast %c15_i32 : i32 to vector<256x1xi32>
    %18 = arith.cmpi slt, %16, %17 : vector<256x1xi32>
    %c0_4 = arith.constant 0 : index
    %c0_5 = arith.constant 0 : index
    %19 = vector.load %arg5[%c0_4, %c0_5] : memref<4x20xf32, #tpu.memory_space<vmem>>, vector<1x20xf32>
    %20 = vector.broadcast %19 : vector<1x20xf32> to vector<256x20xf32>
    %21 = arith.addf %7, %20 : vector<256x20xf32>
    %cst_6 = arith.constant 0.000000e+00 : f32
    %22 = vector.broadcast %cst_6 : f32 to vector<256x20xf32>
    %23 = arith.maximumf %21, %22 : vector<256x20xf32>
    %cst_7 = arith.constant 0.000000e+00 : f32
    %24 = vector.shape_cast %18 : vector<256x1xi1> to vector<256x1xi1>
    %25 = vector.broadcast %24 : vector<256x1xi1> to vector<256x20xi1>
    %26 = vector.broadcast %cst_7 : f32 to vector<256x20xf32>
    %27 = arith.select %25, %23, %26 : vector<256x20xi1>, vector<256x20xf32>
    %c13_i32 = arith.constant 13 : i32
    %28 = vector.broadcast %c13_i32 : i32 to vector<256x1xi32>
    %29 = arith.cmpi slt, %16, %28 : vector<256x1xi32>
    %c1 = arith.constant 1 : index
    %c0_8 = arith.constant 0 : index
    %30 = vector.load %arg5[%c1, %c0_8] : memref<4x20xf32, #tpu.memory_space<vmem>>, vector<1x20xf32>
    %31 = vector.broadcast %30 : vector<1x20xf32> to vector<256x20xf32>
    %32 = arith.addf %14, %31 : vector<256x20xf32>
    %cst_9 = arith.constant 0.000000e+00 : f32
    %33 = vector.broadcast %cst_9 : f32 to vector<256x20xf32>
    %34 = arith.maximumf %32, %33 : vector<256x20xf32>
    %cst_10 = arith.constant 0.000000e+00 : f32
    %35 = vector.shape_cast %29 : vector<256x1xi1> to vector<256x1xi1>
    %36 = vector.broadcast %35 : vector<256x1xi1> to vector<256x20xi1>
    %37 = vector.broadcast %cst_10 : f32 to vector<256x20xf32>
    %38 = arith.select %36, %34, %37 : vector<256x20xi1>, vector<256x20xf32>
    %39 = tpu.concatenate %27, %38 in 1 : vector<256x20xf32>, vector<256x20xf32> -> vector<256x40xf32>
    %40 = vector.extract_strided_slice %39 {offsets = [0, 0], sizes = [16, 40], strides = [1, 1]} : vector<256x40xf32> to vector<16x40xf32>
    %cst_11 = arith.constant dense<0xFF800000> : vector<40xf32>
    %41 = vector.multi_reduction <maximumf>, %40, %cst_11 [0] : vector<16x40xf32> to vector<40xf32>
    %42 = vector.shape_cast %41 : vector<40xf32> to vector<1x40xf32>
    %43 = vector.extract_strided_slice %39 {offsets = [16, 0], sizes = [16, 40], strides = [1, 1]} : vector<256x40xf32> to vector<16x40xf32>
    %cst_12 = arith.constant dense<0xFF800000> : vector<40xf32>
    %44 = vector.multi_reduction <maximumf>, %43, %cst_12 [0] : vector<16x40xf32> to vector<40xf32>
    %45 = vector.shape_cast %44 : vector<40xf32> to vector<1x40xf32>
    %46 = vector.extract_strided_slice %39 {offsets = [32, 0], sizes = [16, 40], strides = [1, 1]} : vector<256x40xf32> to vector<16x40xf32>
    %cst_13 = arith.constant dense<0xFF800000> : vector<40xf32>
    %47 = vector.multi_reduction <maximumf>, %46, %cst_13 [0] : vector<16x40xf32> to vector<40xf32>
    %48 = vector.shape_cast %47 : vector<40xf32> to vector<1x40xf32>
    %49 = vector.extract_strided_slice %39 {offsets = [48, 0], sizes = [16, 40], strides = [1, 1]} : vector<256x40xf32> to vector<16x40xf32>
    %cst_14 = arith.constant dense<0xFF800000> : vector<40xf32>
    %50 = vector.multi_reduction <maximumf>, %49, %cst_14 [0] : vector<16x40xf32> to vector<40xf32>
    %51 = vector.shape_cast %50 : vector<40xf32> to vector<1x40xf32>
    %52 = vector.extract_strided_slice %39 {offsets = [64, 0], sizes = [16, 40], strides = [1, 1]} : vector<256x40xf32> to vector<16x40xf32>
    %cst_15 = arith.constant dense<0xFF800000> : vector<40xf32>
    %53 = vector.multi_reduction <maximumf>, %52, %cst_15 [0] : vector<16x40xf32> to vector<40xf32>
    %54 = vector.shape_cast %53 : vector<40xf32> to vector<1x40xf32>
    %55 = vector.extract_strided_slice %39 {offsets = [80, 0], sizes = [16, 40], strides = [1, 1]} : vector<256x40xf32> to vector<16x40xf32>
    %cst_16 = arith.constant dense<0xFF800000> : vector<40xf32>
    %56 = vector.multi_reduction <maximumf>, %55, %cst_16 [0] : vector<16x40xf32> to vector<40xf32>
    %57 = vector.shape_cast %56 : vector<40xf32> to vector<1x40xf32>
    %58 = vector.extract_strided_slice %39 {offsets = [96, 0], sizes = [16, 40], strides = [1, 1]} : vector<256x40xf32> to vector<16x40xf32>
    %cst_17 = arith.constant dense<0xFF800000> : vector<40xf32>
    %59 = vector.multi_reduction <maximumf>, %58, %cst_17 [0] : vector<16x40xf32> to vector<40xf32>
    %60 = vector.shape_cast %59 : vector<40xf32> to vector<1x40xf32>
    %61 = vector.extract_strided_slice %39 {offsets = [112, 0], sizes = [16, 40], strides = [1, 1]} : vector<256x40xf32> to vector<16x40xf32>
    %cst_18 = arith.constant dense<0xFF800000> : vector<40xf32>
    %62 = vector.multi_reduction <maximumf>, %61, %cst_18 [0] : vector<16x40xf32> to vector<40xf32>
    %63 = vector.shape_cast %62 : vector<40xf32> to vector<1x40xf32>
    %64 = vector.extract_strided_slice %39 {offsets = [128, 0], sizes = [16, 40], strides = [1, 1]} : vector<256x40xf32> to vector<16x40xf32>
    %cst_19 = arith.constant dense<0xFF800000> : vector<40xf32>
    %65 = vector.multi_reduction <maximumf>, %64, %cst_19 [0] : vector<16x40xf32> to vector<40xf32>
    %66 = vector.shape_cast %65 : vector<40xf32> to vector<1x40xf32>
    %67 = vector.extract_strided_slice %39 {offsets = [144, 0], sizes = [16, 40], strides = [1, 1]} : vector<256x40xf32> to vector<16x40xf32>
    %cst_20 = arith.constant dense<0xFF800000> : vector<40xf32>
    %68 = vector.multi_reduction <maximumf>, %67, %cst_20 [0] : vector<16x40xf32> to vector<40xf32>
    %69 = vector.shape_cast %68 : vector<40xf32> to vector<1x40xf32>
    %70 = vector.extract_strided_slice %39 {offsets = [160, 0], sizes = [16, 40], strides = [1, 1]} : vector<256x40xf32> to vector<16x40xf32>
    %cst_21 = arith.constant dense<0xFF800000> : vector<40xf32>
    %71 = vector.multi_reduction <maximumf>, %70, %cst_21 [0] : vector<16x40xf32> to vector<40xf32>
    %72 = vector.shape_cast %71 : vector<40xf32> to vector<1x40xf32>
    %73 = vector.extract_strided_slice %39 {offsets = [176, 0], sizes = [16, 40], strides = [1, 1]} : vector<256x40xf32> to vector<16x40xf32>
    %cst_22 = arith.constant dense<0xFF800000> : vector<40xf32>
    %74 = vector.multi_reduction <maximumf>, %73, %cst_22 [0] : vector<16x40xf32> to vector<40xf32>
    %75 = vector.shape_cast %74 : vector<40xf32> to vector<1x40xf32>
    %76 = vector.extract_strided_slice %39 {offsets = [192, 0], sizes = [16, 40], strides = [1, 1]} : vector<256x40xf32> to vector<16x40xf32>
    %cst_23 = arith.constant dense<0xFF800000> : vector<40xf32>
    %77 = vector.multi_reduction <maximumf>, %76, %cst_23 [0] : vector<16x40xf32> to vector<40xf32>
    %78 = vector.shape_cast %77 : vector<40xf32> to vector<1x40xf32>
    %79 = vector.extract_strided_slice %39 {offsets = [208, 0], sizes = [16, 40], strides = [1, 1]} : vector<256x40xf32> to vector<16x40xf32>
    %cst_24 = arith.constant dense<0xFF800000> : vector<40xf32>
    %80 = vector.multi_reduction <maximumf>, %79, %cst_24 [0] : vector<16x40xf32> to vector<40xf32>
    %81 = vector.shape_cast %80 : vector<40xf32> to vector<1x40xf32>
    %82 = vector.extract_strided_slice %39 {offsets = [224, 0], sizes = [16, 40], strides = [1, 1]} : vector<256x40xf32> to vector<16x40xf32>
    %cst_25 = arith.constant dense<0xFF800000> : vector<40xf32>
    %83 = vector.multi_reduction <maximumf>, %82, %cst_25 [0] : vector<16x40xf32> to vector<40xf32>
    %84 = vector.shape_cast %83 : vector<40xf32> to vector<1x40xf32>
    %85 = vector.extract_strided_slice %39 {offsets = [240, 0], sizes = [16, 40], strides = [1, 1]} : vector<256x40xf32> to vector<16x40xf32>
    %cst_26 = arith.constant dense<0xFF800000> : vector<40xf32>
    %86 = vector.multi_reduction <maximumf>, %85, %cst_26 [0] : vector<16x40xf32> to vector<40xf32>
    %87 = vector.shape_cast %86 : vector<40xf32> to vector<1x40xf32>
    %88 = tpu.concatenate %42, %45, %48, %51, %54, %57, %60, %63, %66, %69, %72, %75, %78, %81, %84, %87 in 0 : vector<1x40xf32>, vector<1x40xf32>, vector<1x40xf32>, vector<1x40xf32>, vector<1x40xf32>, vector<1x40xf32>, vector<1x40xf32>, vector<1x40xf32>, vector<1x40xf32>, vector<1x40xf32>, vector<1x40xf32>, vector<1x40xf32>, vector<1x40xf32>, vector<1x40xf32>, vector<1x40xf32>, vector<1x40xf32> -> vector<16x40xf32>
    %89 = vector.extract_strided_slice %88 {offsets = [0, 0], sizes = [16, 20], strides = [1, 1]} : vector<16x40xf32> to vector<16x20xf32>
    %90 = vector.extract_strided_slice %88 {offsets = [0, 20], sizes = [16, 20], strides = [1, 1]} : vector<16x40xf32> to vector<16x20xf32>
    %91 = tpu.concatenate %89, %90 in 0 : vector<16x20xf32>, vector<16x20xf32> -> vector<32x20xf32>
    %c0_27 = arith.constant 0 : index
    %c0_28 = arith.constant 0 : index
    %92 = vector.load %arg3[%c0_27, %c0_28] : memref<20x40xf32, #tpu.memory_space<vmem>>, vector<20x40xf32>
    %cst_29 = arith.constant dense<0.000000e+00> : vector<32x40xf32>
    %93 = tpu.matmul %91, %92, %cst_29 {dimension_numbers = #tpu.dot_dimension_numbers<[1], [0], [0], [1], [0, 0, 1, 1], [], []>} : vector<32x20xf32>, vector<20x40xf32>, vector<32x40xf32> -> vector<32x40xf32>
    %94 = vector.extract_strided_slice %93 {offsets = [0, 0], sizes = [32, 20], strides = [1, 1]} : vector<32x40xf32> to vector<32x20xf32>
    %c2 = arith.constant 2 : index
    %c0_30 = arith.constant 0 : index
    %95 = vector.load %arg5[%c2, %c0_30] : memref<4x20xf32, #tpu.memory_space<vmem>>, vector<1x20xf32>
    %96 = vector.broadcast %95 : vector<1x20xf32> to vector<32x20xf32>
    %97 = arith.addf %94, %96 : vector<32x20xf32>
    %98 = vector.extract_strided_slice %93 {offsets = [0, 20], sizes = [32, 20], strides = [1, 1]} : vector<32x40xf32> to vector<32x20xf32>
    %c3 = arith.constant 3 : index
    %c0_31 = arith.constant 0 : index
    %99 = vector.load %arg5[%c3, %c0_31] : memref<4x20xf32, #tpu.memory_space<vmem>>, vector<1x20xf32>
    %100 = vector.broadcast %99 : vector<1x20xf32> to vector<32x20xf32>
    %101 = arith.addf %98, %100 : vector<32x20xf32>
    %102 = vector.extract_strided_slice %97 {offsets = [0, 0], sizes = [16, 20], strides = [1, 1]} : vector<32x20xf32> to vector<16x20xf32>
    %103 = vector.extract_strided_slice %97 {offsets = [16, 0], sizes = [16, 20], strides = [1, 1]} : vector<32x20xf32> to vector<16x20xf32>
    %104 = vector.extract_strided_slice %101 {offsets = [0, 0], sizes = [16, 20], strides = [1, 1]} : vector<32x20xf32> to vector<16x20xf32>
    %105 = vector.extract_strided_slice %101 {offsets = [16, 0], sizes = [16, 20], strides = [1, 1]} : vector<32x20xf32> to vector<16x20xf32>
    %106 = tpu.iota {dimensions = array<i32: 0>} : vector<20x10xi32>
    %107 = tpu.iota {dimensions = array<i32: 1>} : vector<20x10xi32>
    %c2_i32 = arith.constant 2 : i32
    %108 = vector.broadcast %c2_i32 : i32 to vector<20x10xi32>
    %109 = arith.muli %107, %108 : vector<20x10xi32>
    %110 = arith.cmpi sge, %106, %109 : vector<20x10xi32>
    %c1_i32 = arith.constant 1 : i32
    %111 = vector.broadcast %c1_i32 : i32 to vector<20x10xi32>
    %112 = arith.addi %107, %111 : vector<20x10xi32>
    %c2_i32_32 = arith.constant 2 : i32
    %113 = vector.broadcast %c2_i32_32 : i32 to vector<20x10xi32>
    %114 = arith.muli %112, %113 : vector<20x10xi32>
    %115 = arith.cmpi slt, %106, %114 : vector<20x10xi32>
    %116 = arith.andi %110, %115 : vector<20x10xi1>
    %117 = arith.extui %116 : vector<20x10xi1> to vector<20x10xi32>
    %118 = arith.sitofp %117 : vector<20x10xi32> to vector<20x10xf32>
    %119 = tpu.iota {dimensions = array<i32: 0>} : vector<10x20xi32>
    %120 = tpu.iota {dimensions = array<i32: 1>} : vector<10x20xi32>
    %c2_i32_33 = arith.constant 2 : i32
    %121 = vector.broadcast %c2_i32_33 : i32 to vector<10x20xi32>
    %122 = arith.muli %119, %121 : vector<10x20xi32>
    %123 = arith.cmpi sge, %120, %122 : vector<10x20xi32>
    %c1_i32_34 = arith.constant 1 : i32
    %124 = vector.broadcast %c1_i32_34 : i32 to vector<10x20xi32>
    %125 = arith.addi %119, %124 : vector<10x20xi32>
    %c2_i32_35 = arith.constant 2 : i32
    %126 = vector.broadcast %c2_i32_35 : i32 to vector<10x20xi32>
    %127 = arith.muli %125, %126 : vector<10x20xi32>
    %128 = arith.cmpi slt, %120, %127 : vector<10x20xi32>
    %129 = arith.andi %123, %128 : vector<10x20xi1>
    %130 = arith.extui %129 : vector<10x20xi1> to vector<10x20xi32>
    %131 = arith.sitofp %130 : vector<10x20xi32> to vector<10x20xf32>
    %132 = arith.mulf %102, %104 : vector<16x20xf32>
    %133 = arith.mulf %102, %105 : vector<16x20xf32>
    %134 = arith.mulf %103, %104 : vector<16x20xf32>
    %135 = arith.mulf %103, %105 : vector<16x20xf32>
    %136 = tpu.concatenate %132, %133, %134, %135 in 0 : vector<16x20xf32>, vector<16x20xf32>, vector<16x20xf32>, vector<16x20xf32> -> vector<64x20xf32>
    %cst_36 = arith.constant dense<0.000000e+00> : vector<64x10xf32>
    %137 = tpu.matmul %136, %118, %cst_36 {dimension_numbers = #tpu.dot_dimension_numbers<[1], [0], [0], [1], [0, 0, 1, 1], [], []>} : vector<64x20xf32>, vector<20x10xf32>, vector<64x10xf32> -> vector<64x10xf32>
    %cst_37 = arith.constant 0.223606795 : f32
    %138 = vector.broadcast %cst_37 : f32 to vector<64x10xf32>
    %139 = arith.mulf %137, %138 : vector<64x10xf32>
    %140 = vector.extract_strided_slice %139 {offsets = [0, 0], sizes = [16, 10], strides = [1, 1]} : vector<64x10xf32> to vector<16x10xf32>
    %141 = vector.extract_strided_slice %139 {offsets = [16, 0], sizes = [16, 10], strides = [1, 1]} : vector<64x10xf32> to vector<16x10xf32>
    %142 = vector.extract_strided_slice %139 {offsets = [32, 0], sizes = [16, 10], strides = [1, 1]} : vector<64x10xf32> to vector<16x10xf32>
    %143 = vector.extract_strided_slice %139 {offsets = [48, 0], sizes = [16, 10], strides = [1, 1]} : vector<64x10xf32> to vector<16x10xf32>
    %144 = arith.maximumf %140, %141 : vector<16x10xf32>
    %145 = arith.subf %140, %144 : vector<16x10xf32>
    %146 = math.exp %145 : vector<16x10xf32>
    %147 = arith.subf %141, %144 : vector<16x10xf32>
    %148 = math.exp %147 : vector<16x10xf32>
    %149 = arith.addf %146, %148 : vector<16x10xf32>
    %cst_38 = arith.constant 1.000000e+00 : f32
    %150 = vector.broadcast %cst_38 : f32 to vector<16x10xf32>
    %151 = arith.divf %150, %149 : vector<16x10xf32>
    %152 = arith.mulf %146, %151 : vector<16x10xf32>
    %153 = arith.mulf %148, %151 : vector<16x10xf32>
    %154 = arith.maximumf %142, %143 : vector<16x10xf32>
    %155 = arith.subf %142, %154 : vector<16x10xf32>
    %156 = math.exp %155 : vector<16x10xf32>
    %157 = arith.subf %143, %154 : vector<16x10xf32>
    %158 = math.exp %157 : vector<16x10xf32>
    %159 = arith.addf %156, %158 : vector<16x10xf32>
    %cst_39 = arith.constant 1.000000e+00 : f32
    %160 = vector.broadcast %cst_39 : f32 to vector<16x10xf32>
    %161 = arith.divf %160, %159 : vector<16x10xf32>
    %162 = arith.mulf %156, %161 : vector<16x10xf32>
    %163 = arith.mulf %158, %161 : vector<16x10xf32>
    %164 = tpu.concatenate %152, %153, %162, %163 in 0 : vector<16x10xf32>, vector<16x10xf32>, vector<16x10xf32>, vector<16x10xf32> -> vector<64x10xf32>
    %cst_40 = arith.constant dense<0.000000e+00> : vector<64x20xf32>
    %165 = tpu.matmul %164, %131, %cst_40 {dimension_numbers = #tpu.dot_dimension_numbers<[1], [0], [0], [1], [0, 0, 1, 1], [], []>} : vector<64x10xf32>, vector<10x20xf32>, vector<64x20xf32> -> vector<64x20xf32>
    %166 = vector.extract_strided_slice %165 {offsets = [0, 0], sizes = [16, 20], strides = [1, 1]} : vector<64x20xf32> to vector<16x20xf32>
    %167 = vector.extract_strided_slice %165 {offsets = [16, 0], sizes = [16, 20], strides = [1, 1]} : vector<64x20xf32> to vector<16x20xf32>
    %168 = vector.extract_strided_slice %165 {offsets = [32, 0], sizes = [16, 20], strides = [1, 1]} : vector<64x20xf32> to vector<16x20xf32>
    %169 = vector.extract_strided_slice %165 {offsets = [48, 0], sizes = [16, 20], strides = [1, 1]} : vector<64x20xf32> to vector<16x20xf32>
    %170 = arith.mulf %166, %104 : vector<16x20xf32>
    %171 = arith.mulf %167, %105 : vector<16x20xf32>
    %172 = arith.addf %170, %171 : vector<16x20xf32>
    %173 = arith.addf %172, %89 : vector<16x20xf32>
    %174 = arith.mulf %168, %104 : vector<16x20xf32>
    %175 = arith.mulf %169, %105 : vector<16x20xf32>
    %176 = arith.addf %174, %175 : vector<16x20xf32>
    %177 = arith.addf %176, %90 : vector<16x20xf32>
    %178 = tpu.concatenate %173, %177 in 1 : vector<16x20xf32>, vector<16x20xf32> -> vector<16x40xf32>
    %c0_41 = arith.constant 0 : index
    %c0_42 = arith.constant 0 : index
    %179 = vector.load %arg4[%c0_41, %c0_42] : memref<40x3xf32, #tpu.memory_space<vmem>>, vector<40x3xf32>
    %cst_43 = arith.constant dense<0.000000e+00> : vector<16x3xf32>
    %180 = tpu.matmul %178, %179, %cst_43 {dimension_numbers = #tpu.dot_dimension_numbers<[1], [0], [0], [1], [0, 0, 1, 1], [], []>} : vector<16x40xf32>, vector<40x3xf32>, vector<16x3xf32> -> vector<16x3xf32>
    %c0_44 = arith.constant 0 : index
    %c0_45 = arith.constant 0 : index
    %181 = vector.load %arg6[%c0_44, %c0_45] : memref<1x3xf32, #tpu.memory_space<vmem>>, vector<1x3xf32>
    %182 = vector.broadcast %181 : vector<1x3xf32> to vector<16x3xf32>
    %183 = arith.addf %180, %182 : vector<16x3xf32>
    %c0_46 = arith.constant 0 : index
    %c0_47 = arith.constant 0 : index
    %184 = vector.load %arg7[%c0_46, %c0_47] : memref<16x3xf32, #tpu.memory_space<vmem>>, vector<16x3xf32>
    tpu.vector_store %arg7[%c0_46, %c0_47], %183 {strides = array<i32>} : memref<16x3xf32, #tpu.memory_space<vmem>>, vector<16x3xf32>,
    return
  }
  func.func @transform_0(%arg0: i32) -> (i32, i32) {
    %c0_i32 = arith.constant 0 : i32
    %c0_i32_0 = arith.constant 0 : i32
    return %arg0, %c0_i32 : i32, i32
  }
  func.func @transform_1(%arg0: i32) -> (i32, i32) {
    %c0_i32 = arith.constant 0 : i32
    %c0_i32_0 = arith.constant 0 : i32
    %c0_i32_1 = arith.constant 0 : i32
    return %c0_i32, %c0_i32_0 : i32, i32
  }
  func.func @transform_2(%arg0: i32) -> (i32, i32) {
    %c0_i32 = arith.constant 0 : i32
    %c0_i32_0 = arith.constant 0 : i32
    %c0_i32_1 = arith.constant 0 : i32
    return %c0_i32, %c0_i32_0 : i32, i32
  }
  func.func @transform_3(%arg0: i32) -> (i32, i32) {
    %c0_i32 = arith.constant 0 : i32
    %c0_i32_0 = arith.constant 0 : i32
    %c0_i32_1 = arith.constant 0 : i32
    return %c0_i32, %c0_i32_0 : i32, i32
  }
  func.func @transform_4(%arg0: i32) -> (i32, i32) {
    %c0_i32 = arith.constant 0 : i32
    %c0_i32_0 = arith.constant 0 : i32
    %c0_i32_1 = arith.constant 0 : i32
    return %c0_i32, %c0_i32_0 : i32, i32
  }
  func.func @transform_5(%arg0: i32) -> (i32, i32) {
    %c0_i32 = arith.constant 0 : i32
    %c0_i32_0 = arith.constant 0 : i32
    %c0_i32_1 = arith.constant 0 : i32
    return %c0_i32, %c0_i32_0 : i32, i32
  }
  func.func @transform_6(%arg0: i32) -> (i32, i32) {
    %c0_i32 = arith.constant 0 : i32
    %c0_i32_0 = arith.constant 0 : i32
    return %arg0, %c0_i32 : i32, i32
  }
}

</mosaic_0001>

<bundles_post_ra>
// kernel: tpu_custom_call.1
= control target key start
LH: loop header
LB: loop body
LE: loop exit
PB: predicated region body
PF: predicated region fallthrough
CT: control target
= control target key end

     0   :  { %s3021_s21 = smov 0   ;;  %s4522_s0 = inlined_call_operand.vmem [shape: bf16[512,200], index: 0, kind: input, shape index: {}]   ;;  %s4523_s1 = inlined_call_operand.vmem [shape: bf16[200,120], index: 1, kind: input, shape index: {}]   ;;  %s4524_s2 = inlined_call_operand.vmem [shape: f32[20,40], index: 2, kind: input, shape index: {}]   ;;  %s4525_s3 = inlined_call_operand.vmem [shape: f32[40,3], index: 3, kind: input, shape index: {}]   ;;  %s4526_s4 = inlined_call_operand.vmem [shape: f32[4,20], index: 4, kind: input, shape index: {}]   ;;  %s4527_s5 = inlined_call_operand.vmem [shape: f32[1,3], index: 5, kind: input, shape index: {}]   ;;  %s4528_s6 = inlined_call_operand.vmem [shape: f32[32,3], index: 6, kind: output, shape index: {}]  }
   0x1 LB: > { %s2609_s22 = sadd.s32 4294967295, %s2974_s21   ;;  %p2613_p0 = scmp.ge.s32.totalorder %s2974_s21, 1  ;;  %s2974_s21 = sphi %s3021_s21, %s16_s21  }
   0x2   : > { %p214_p1 = scmp.lt.s32.totalorder %s2974_s21, 3 }
   0x4   : > { %p215_p2 = pnand %p2613_p0, %p214_p1 }
   0x6   : > { %218 = sbr.rel (%p215_p2) target bundleno = 1995 (0x7cb), region = 44 }
   0xd   : > { %v2883_v0 = vld [vmem:[%s4523_s1] sm:$0xff]   ;;  %v4531_v1 = vmov 0   ;;  %v2884_v2 = vld [vmem:[%s4523_s1 + $0x8] sm:$0xff]   ;;  %s2614_s27 = sshll.u32 %s2609_s22, 5  ;;  %v2885_v3 = vld [vmem:[%s4523_s1 + $0x10] sm:$0xff]   ;;  %v4530_v4 = vmov 1   ;;  %v4529_v11 = vlaneseq }
   0xe   : > { %588 = vmatprep.subr.bf16.mxu0 %v4531_v1  ;;  %2837 = vmatprep.subr.bf16.mxu1 %v4531_v1  ;;  %p246_p3 = scmp.lt.s32.totalorder %s2614_s27, 63  ;;  %v2886_v5 = vld [vmem:[%s4523_s1 + $0x18] sm:$0xff]   ;;  %vm535_vm0 = vcmask 588800   ;;  %v2887_v7 = vld [vmem:[%s4523_s1 + $0x20] sm:$0xff]   ;;  %v2888_v9 = vld [vmem:[%s4523_s1 + $0x28] sm:$0xff]   ;;  %s2978_s28 = smov 40  }
   0xf   : > { %589 = vmatpush1.bf16.msra.mxu0 %v2883_v0  ;;  %2850 = vmatpush1.bf16.msra.mxu1 %v2883_v0  ;;  %v2889_v10 = vld [vmem:[%s4523_s1 + $0x30] sm:$0xff]   ;;  %v2890_v12 = vld [vmem:[%s4523_s1 + $0x38] sm:$0xff]   ;;  %v3082_v13 = vshrl.u32 %v4529_v11, 7  ;;  %v2891_v14 = vld [vmem:[%s4523_s1 + $0x40] sm:$0xff]   ;;  %vm584_vm2 = vcmask 1043456   ;;  %vm782_vm3 = vcmask 1046528  }
  0x10   : > { %590 = vmatprep.subr.bf16.mxu0 %v4531_v1  ;;  %2838 = vmatprep.subr.bf16.mxu1 %v4531_v1  ;;  %s4637_s27 = smov (!%p246_p3, %s2614_s27), 63  ;;  %v2892_v16 = vld [vmem:[%s4523_s1 + $0x48] sm:$0xff]   ;;  %v2681_v17 = vld [vmem:[%s4526_s4 + $0x1] ss:$0 sm:$0xff]  ;;  %v2893_v19 = vld [vmem:[%s4523_s1 + $0x50] sm:$0xff]   ;;  %vm1170_vm4 = vcmask 1044480  }
  0x11   : > { %2882 = vset.pattern.permute.xlu1 %v4531_v1  ;;  %2881 = vset.pattern.permute.xlu0 %v4531_v1  ;;  %s2720_s30 = sshll.u32 %s4637_s27, 3  ;;  %4569 = vst [vmem:[#allocation2_spill] sm:$0xff] %v3082_v13  ;;  %v3090_v15 = vadd.s32 8, %v3082_v13  ;;  %v2894_v20 = vld [vmem:[%s4523_s1 + $0x58] sm:$0xff]   ;;  %v2895_v21 = vld [vmem:[%s4523_s1 + $0x60] ss:$0 sps:$4 sm:$0xff]  }
  0x12   : > { %1558 = vperm.xlu0 %2881, %v4530_v4   ;;  %s3055_s11 = scalar_lea.vmem %s4522_s0, %s2720_s30  ;;  %1488 = vrot.lane.b32.xlu1 %v2681_v17, %s2978_s28  ;;  %v586_v22 = vsel %vm584_vm2, %v2895_v21, 0  ;;  %vm976_vm5 = vcmask 1045504   ;;  %s2980_s12 = smov 68   ;;  %vm1725_vm11 = vcmask 162816   ;;  %vm1758_vm12 = vcmask 326656  }
  0x13   : > { %591 = vmatpush1.bf16.msra.mxu0 %v2884_v2  ;;  %2851 = vmatpush1.bf16.msra.mxu1 %v2884_v2  ;;  %v2898_v6 = vld [vmem:[%s3055_s11 + $0x4] ss:$8 sps:$4 sm:$0xff]   ;;  %v2901_v8 = vld [vmem:[%s3055_s11 + $0xb4] ss:$8 sps:$4 sm:$0xff]   ;;  %4570 = vst [vmem:[#allocation3_spill] sm:$0xff] %v3090_v15  ;;  %vm1481_vm1 = vcmp.lt.s32.totalorder %v3090_v15, 13 }
  0x14   : > { %592 = vmatprep.subr.bf16.mxu0 %v4531_v1  ;;  %2839 = vmatprep.subr.bf16.mxu1 %v4531_v1  ;;  %v1556_v18 = vsel %vm1481_vm1, 1, %v4531_v1  ;;  %v2896_v23 = vld [vmem:[%s3055_s11] ss:$8 sps:$4 sm:$0xff]   ;;  %v2899_v24 = vld [vmem:[%s3055_s11 + $0xb0] ss:$8 sps:$4 sm:$0xff]   ;;  %s2981_s13 = smov 88  }
  0x15   : > { %2664 = vmatprep.mubr.msk.bf16.mxu0 %vm535_vm0, %v2898_v6  ;;  %2675 = vmatprep.mubr.msk.bf16.mxu1 %vm535_vm0, %v2901_v8  ;;  %v2902_v25 = vld [vmem:[%s3055_s11 + $0x14] ss:$8 sps:$4 sm:$0xff]   ;;  %v2904_v26 = vld [vmem:[%s3055_s11 + $0xc4] ss:$8 sps:$4 sm:$0xff]   ;;  %v2906_v27 = vld [vmem:[%s3055_s11 + $0x10] ss:$8 sps:$4 sm:$0xff]  }
  0x16   : > { %1561 = vperm.xlu1 %2882, %v1556_v18   ;;  %v2907_v28 = vld [vmem:[%s3055_s11 + $0xc0] ss:$8 sps:$4 sm:$0xff]   ;;  %v2908_v29 = vld [vmem:[%s3055_s11 + $0x24] ss:$8 sps:$4 sm:$0xff]   ;;  %v2911_v30 = vld [vmem:[%s3055_s11 + $0xd4] ss:$8 sps:$4 sm:$0xff]  }
  0x17   : > { %593 = vmatpush1.bf16.msra.mxu0 %v2885_v3  ;;  %2852 = vmatpush1.bf16.msra.mxu1 %v2885_v3  ;;  %v2910_v31 = vld [vmem:[%s3055_s11 + $0x20] ss:$8 sps:$4 sm:$0xff]   ;;  %v2913_v32 = vld [vmem:[%s3055_s11 + $0xd0] ss:$8 sps:$4 sm:$0xff]   ;;  %v2914_v33 = vld [vmem:[%s3055_s11 + $0x34] ss:$8 sps:$4 sm:$0xff]  }
  0x18   : > { %594 = vmatprep.subr.bf16.mxu0 %v4531_v1  ;;  %2840 = vmatprep.subr.bf16.mxu1 %v4531_v1  ;;  %v2920_v34 = vld [vmem:[%s3055_s11 + $0xe4] ss:$8 sps:$4 sm:$0xff]   ;;  %v2916_v35 = vld [vmem:[%s3055_s11 + $0x30] ss:$8 sps:$4 sm:$0xff]   ;;  %v2922_v36 = vld [vmem:[%s3055_s11 + $0xe0] ss:$8 sps:$4 sm:$0xff]  }
  0x19   : > { %v2917_v37 = vld [vmem:[%s3055_s11 + $0x44] ss:$8 sps:$4 sm:$0xff]   ;;  %v2935_v38 = vld [vmem:[%s3055_s11 + $0xf4] ss:$8 sps:$4 sm:$0xff]   ;;  %v2919_v39 = vld [vmem:[%s3055_s11 + $0x40] ss:$8 sps:$4 sm:$0xff]  }
  0x1a   : > { %v2937_v40 = vld [vmem:[%s3055_s11 + $0xf0] ss:$8 sps:$4 sm:$0xff]   ;;  %v2923_v41 = vld [vmem:[%s3055_s11 + $0x54] ss:$8 sps:$4 sm:$0xff]   ;;  %v2926_v43 = vld [vmem:[%s3055_s11 + $0x64] ss:$8 sps:$4 sm:$0xff]  }
  0x1b   : > { %595 = vmatpush1.bf16.msra.mxu0 %v2886_v5  ;;  %2853 = vmatpush1.bf16.msra.mxu1 %v2886_v5  ;;  %v2925_v42 = vld [vmem:[%s3055_s11 + $0x50] ss:$8 sps:$4 sm:$0xff]   ;;  %v2928_v44 = vld [vmem:[%s3055_s11 + $0x60] ss:$8 sps:$4 sm:$0xff]   ;;  %v2929_v45 = vld [vmem:[%s3055_s11 + $0x74] ss:$8 sps:$4 sm:$0xff]  }
  0x1c   : > { %596 = vmatprep.subr.bf16.mxu0 %v4531_v1  ;;  %2841 = vmatprep.subr.bf16.mxu1 %v4531_v1  ;;  %v2931_v46 = vld [vmem:[%s3055_s11 + $0x70] ss:$8 sps:$4 sm:$0xff]   ;;  %v2932_v47 = vld [vmem:[%s3055_s11 + $0x84] ss:$8 sps:$4 sm:$0xff]   ;;  %v2934_v48 = vld [vmem:[%s3055_s11 + $0x80] ss:$8 sps:$4 sm:$0xff]  }
  0x1d   : > { %v2938_v49 = vld [vmem:[%s3055_s11 + $0x94] ss:$8 sps:$4 sm:$0xff]   ;;  %v2940_v50 = vld [vmem:[%s3055_s11 + $0x90] ss:$8 sps:$4 sm:$0xff]   ;;  %v2941_v51 = vld [vmem:[%s3055_s11 + $0xa4] ss:$8 sps:$4 sm:$0xff]  }
  0x1e   : > { %v2943_v52 = vld [vmem:[%s3055_s11 + $0xa0] ss:$8 sps:$4 sm:$0xff]   ;;  %s2979_s11 = smov 108   ;;  %vm1903_vm13 = vcmask 1040384   ;;  %vm1905_vm14 = vcmask 1041408   ;;  %vm1907_vm15 = vcmask 1042432  }
  0x1f   : > { %597 = vmatpush1.bf16.msra.mxu0 %v2887_v7  ;;  %2854 = vmatpush1.bf16.msra.mxu1 %v2887_v7  ;;  %s2983_s26 = smov 20   ;;  %s2617_s15 = sshll.u32 %s2609_s22, 1 }
  0x20   : > { %598 = vmatprep.subr.bf16.mxu0 %v4531_v1  ;;  %2842 = vmatprep.subr.bf16.mxu1 %v4531_v1  ;;  %p253_p4 = scmp.lt.s32.totalorder %s2617_s15, 3 }
  0x22   : > { %s4639_s15 = smov (!%p253_p4, %s2617_s15), 3 }
  0x23   : > { %599 = vmatpush1.bf16.msra.mxu0 %v2888_v9  ;;  %2855 = vmatpush1.bf16.msra.mxu1 %v2888_v9  ;;  %s2618_s16 = sshll.u32 %s4639_s15, 3 }
  0x24   : > { %600 = vmatprep.subr.bf16.mxu0 %v4531_v1  ;;  %2843 = vmatprep.subr.bf16.mxu1 %v4531_v1  ;;  %s256_s23 = scalar_lea.vmem %s4528_s6, %s2618_s16 }
  0x27   : > { %601 = vmatpush1.bf16.msra.mxu0 %v2889_v10  ;;  %2856 = vmatpush1.bf16.msra.mxu1 %v2889_v10 }
  0x28   : > { %602 = vmatprep.subr.bf16.mxu0 %v4531_v1  ;;  %2844 = vmatprep.subr.bf16.mxu1 %v4531_v1 }
  0x2b   : > { %603 = vmatpush1.bf16.msra.mxu0 %v2890_v12  ;;  %2857 = vmatpush1.bf16.msra.mxu1 %v2890_v12 }
  0x2c   : > { %604 = vmatprep.subr.bf16.mxu0 %v4531_v1  ;;  %2845 = vmatprep.subr.bf16.mxu1 %v4531_v1 }
  0x2f   : > { %605 = vmatpush1.bf16.msra.mxu0 %v2891_v14  ;;  %2858 = vmatpush1.bf16.msra.mxu1 %v2891_v14 }
  0x30   : > { %606 = vmatprep.subr.bf16.mxu0 %v4531_v1  ;;  %2846 = vmatprep.subr.bf16.mxu1 %v4531_v1 }
  0x33   : > { %607 = vmatpush1.bf16.msra.mxu0 %v2892_v16  ;;  %2859 = vmatpush1.bf16.msra.mxu1 %v2892_v16 }
  0x34   : > { %608 = vmatprep.subr.bf16.mxu0 %v4531_v1  ;;  %2847 = vmatprep.subr.bf16.mxu1 %v4531_v1 }
  0x37   : > { %609 = vmatpush1.bf16.msra.mxu0 %v2893_v19  ;;  %2860 = vmatpush1.bf16.msra.mxu1 %v2893_v19 }
  0x38   : > { %610 = vmatprep.subr.bf16.mxu0 %v4531_v1  ;;  %2848 = vmatprep.subr.bf16.mxu1 %v4531_v1 }
  0x3b   : > { %611 = vmatpush1.bf16.msra.mxu0 %v2894_v20  ;;  %2861 = vmatpush1.bf16.msra.mxu1 %v2894_v20 }
  0x3c   : > { %612 = vmatprep.subr.bf16.mxu0 %v4531_v1  ;;  %2849 = vmatprep.subr.bf16.mxu1 %v4531_v1 }
  0x3f   : > { %613 = vmatpush1.bf16.msra.mxu0 %v586_v22  ;;  %2862 = vmatpush1.bf16.msra.mxu1 %v586_v22 }
  0x42   : > { %621 = vmatmul.mubr.bf16.vlgmr.msra.gmra.mrb[0].mxu0 %v2896_v23  ;;  %709 = vmatmul.mubr.bf16.vlgmr.msra.gmra.mrb[0].mxu1 %v2899_v24 }
  0x43   : > { %2665 = vmatprep.mubr.msk.bf16.mxu0 %vm535_vm0, %v2902_v25  ;;  %2676 = vmatprep.mubr.msk.bf16.mxu1 %vm535_vm0, %v2904_v26 }
  0x4a   : > { %629 = vmatmul.mubr.bf16.gmra.mrb[4].mxu0 %v2906_v27  ;;  %717 = vmatmul.mubr.bf16.gmra.mrb[4].mxu1 %v2907_v28 }
  0x4b   : > { %2666 = vmatprep.mubr.msk.bf16.mxu0 %vm535_vm0, %v2908_v29  ;;  %2677 = vmatprep.mubr.msk.bf16.mxu1 %vm535_vm0, %v2911_v30 }
  0x52   : > { %637 = vmatmul.mubr.bf16.gmra.mrb[8].mxu0 %v2910_v31  ;;  %725 = vmatmul.mubr.bf16.gmra.mrb[8].mxu1 %v2913_v32 }
  0x53   : > { %2667 = vmatprep.mubr.msk.bf16.mxu0 %vm535_vm0, %v2914_v33  ;;  %2678 = vmatprep.mubr.msk.bf16.mxu1 %vm535_vm0, %v2920_v34 }
  0x5a   : > { %645 = vmatmul.mubr.bf16.gmra.mrb[12].mxu0 %v2916_v35  ;;  %733 = vmatmul.mubr.bf16.gmra.mrb[12].mxu1 %v2922_v36 }
  0x5b   : > { %2668 = vmatprep.mubr.msk.bf16.mxu0 %vm535_vm0, %v2917_v37  ;;  %2679 = vmatprep.mubr.msk.bf16.mxu1 %vm535_vm0, %v2935_v38 }
  0x62   : > { %653 = vmatmul.mubr.bf16.gmra.mrb[16].mxu0 %v2919_v39  ;;  %741 = vmatmul.mubr.bf16.gmra.mrb[16].mxu1 %v2937_v40 }
  0x63   : > { %2669 = vmatprep.mubr.msk.bf16.mxu0 %vm535_vm0, %v2923_v41 }
  0x6a   : > { %661 = vmatmul.mubr.bf16.gmra.mrb[20].mxu0 %v2925_v42 }
  0x6b   : > { %2670 = vmatprep.mubr.msk.bf16.mxu0 %vm535_vm0, %v2926_v43 }
  0x72   : > { %669 = vmatmul.mubr.bf16.gmra.mrb[24].mxu0 %v2928_v44 }
  0x73   : > { %2671 = vmatprep.mubr.msk.bf16.mxu0 %vm535_vm0, %v2929_v45 }
  0x7a   : > { %677 = vmatmul.mubr.bf16.gmra.mrb[28].mxu0 %v2931_v46 }
  0x7b   : > { %2672 = vmatprep.mubr.msk.bf16.mxu0 %vm535_vm0, %v2932_v47 }
  0x82   : > { %685 = vmatmul.mubr.bf16.gmra.mrb[32].mxu0 %v2934_v48 }
  0x83   : > { %2673 = vmatprep.mubr.msk.bf16.mxu0 %vm535_vm0, %v2938_v49 }
  0x8a   : > { %693 = vmatmul.mubr.bf16.gmra.mrb[36].mxu0 %v2940_v50 }
  0x8b   : > { %2674 = vmatprep.mubr.msk.bf16.mxu0 %vm535_vm0, %v2941_v51 }
  0x92   : > { %701 = vmatmul.mubr.bf16.gmra.mrb[40].mxu0 %v2943_v52 }
 0x115   : > { %v3164_v53 = vpop.f32.mrb[0].mxu0  ;;  %v3166_v54 = vpop.f32.mrb[0].mxu1 }
 0x116   : > { %v4534_v55 = vrot.slane %v3166_v54, 1  ;;  %v624_v56 = vpop.f32.mrb[1].mxu0  ;;  %v712_v57 = vpop.f32.mrb[1].mxu1  ;;  %v783_v58 = vrot.slane %v3164_v53, 1  ;;  %v977_v59 = vrot.slane %v3164_v53, 2  ;;  %v1171_v60 = vrot.slane %v3164_v53, 3 }
 0x117   : > { %v3172_v61 = vpop.f32.mrb[2].mxu0  ;;  %v3174_v62 = vpop.f32.mrb[2].mxu1  ;;  %v4533_v12 = vrot.slane %v3166_v54, 2  ;;  %v4532_v14 = vrot.slane %v3166_v54, 3 }
 0x118   : > { %4571 = vst [vmem:[#allocation4_spill] sm:$0xff] %v3174_v62  ;;  %v784_v63 = vrot.slane %v3172_v61, 1  ;;  %v978_v0 = vrot.slane %v3172_v61, 2  ;;  %v1172_v2 = vrot.slane %v3172_v61, 3  ;;  %v828_v3 = vrot.slane %v3174_v62, 1  ;;  %v627_v5 = vpop.f32.mrb[3].mxu0 }
 0x119   : > { %v715_v6 = vpop.f32.mrb[3].mxu1  ;;  %v1022_v16 = vrot.slane %v3174_v62, 2  ;;  %v1216_v17 = vrot.slane %v3174_v62, 3 }
 0x11a   : > { %v829_v7 = vsel %vm782_vm3, %v4534_v55, %v828_v3  ;;  %v785_v8 = vsel %vm782_vm3, %v783_v58, %v784_v63  ;;  %v1173_v9 = vsel %vm1170_vm4, %v1171_v60, %v1172_v2  ;;  %v979_v10 = vsel %vm976_vm5, %v977_v59, %v978_v0 }
 0x11b   : > { %892 = vrot.lane.b32.xlu1 %v829_v7, %s2979_s11  ;;  %848 = vrot.lane.b32.xlu0 %v785_v8, %s2979_s11  ;;  %v1023_v29 = vsel %vm976_vm5, %v4533_v12, %v1022_v16  ;;  %v1217_v30 = vsel %vm1170_vm4, %v4532_v14, %v1216_v17 }
 0x11d   : > { %v3192_v18 = vpop.f32.mrb[4].mxu0  ;;  %v3194_v19 = vpop.f32.mrb[4].mxu1 }
 0x11e   : > { %4572 = vst [vmem:[#allocation5_spill] sm:$0xff] %v3192_v18  ;;  %4573 = vst [vmem:[#allocation6_spill] sm:$0xff] %v3194_v19  ;;  %v786_v20 = vrot.slane %v3192_v18, 1  ;;  %v980_v21 = vrot.slane %v3192_v18, 2  ;;  %v1174_v22 = vrot.slane %v3192_v18, 3  ;;  %v830_v23 = vrot.slane %v3194_v19, 1 }
 0x11f   : > { %v632_v24 = vpop.f32.mrb[5].mxu0  ;;  %v720_v25 = vpop.f32.mrb[5].mxu1  ;;  %v1024_v26 = vrot.slane %v3194_v19, 2  ;;  %v1218_v27 = vrot.slane %v3194_v19, 3  ;;  %1236 = vrot.lane.b32.xlu1 %v1173_v9, %s2980_s12  ;;  %1042 = vrot.lane.b32.xlu0 %v979_v10, %s2981_s13 }
 0x120   : > { %v3204_v28 = vpop.f32.mrb[6].mxu0  ;;  %v3212_v31 = vpop.f32.mrb[6].mxu1  ;;  %v981_v40 = vsel %vm976_vm5, %v978_v0, %v980_v21  ;;  %v787_v41 = vsel %vm782_vm3, %v784_v63, %v786_v20  ;;  %v831_v43 = vsel %vm782_vm3, %v828_v3, %v830_v23  ;;  %v1175_v44 = vsel %vm1170_vm4, %v1172_v2, %v1174_v22 }
 0x121   : > { %4574 = vst [vmem:[#allocation7_spill] sm:$0xff] %v3204_v28  ;;  %4575 = vst [vmem:[#allocation8_spill] sm:$0xff] %v3212_v31  ;;  %v788_v32 = vrot.slane %v3204_v28, 1  ;;  %v982_v33 = vrot.slane %v3204_v28, 2  ;;  %v1176_v34 = vrot.slane %v3204_v28, 3  ;;  %v635_v35 = vpop.f32.mrb[7].mxu0  ;;  %v1219_v42 = vsel %vm1170_vm4, %v1216_v17, %v1218_v27 }
 0x122   : > { %v832_v36 = vrot.slane %v3212_v31, 1  ;;  %v723_v37 = vpop.f32.mrb[7].mxu1  ;;  %v1026_v38 = vrot.slane %v3212_v31, 2  ;;  %v1220_v39 = vrot.slane %v3212_v31, 3  ;;  %v3229_v46 = vsel %vm976_vm5, %v1022_v16, %v1024_v26 }
 0x123   : > { %v789_v45 = vsel %vm782_vm3, %v786_v20, %v788_v32  ;;  %1086 = vrot.lane.b32.xlu1 %v1023_v29, %s2981_s13  ;;  %1280 = vrot.lane.b32.xlu0 %v1217_v30, %s2980_s12  ;;  %v3235_v48 = vsel %vm976_vm5, %v980_v21, %v982_v33  ;;  %v3238_v49 = vsel %vm1170_vm4, %v1174_v22, %v1176_v34 }
 0x124   : > { %v3232_v47 = vsel %vm782_vm3, %v830_v23, %v832_v36  ;;  %v3241_v50 = vsel %vm1170_vm4, %v1218_v27, %v1220_v39  ;;  %v3244_v51 = vsel %vm976_vm5, %v1024_v26, %v1026_v38 }
 0x125   : > { %v3246_v52 = vpop.f32.mrb[8].mxu0  ;;  %v3248_v56 = vpop.f32.mrb[8].mxu1 }
 0x126   : > { %4576 = vst [vmem:[#allocation9_spill] sm:$0xff] %v3246_v52  ;;  %4577 = vst [vmem:[#allocation10_spill] sm:$0xff] %v3248_v56  ;;  %v790_v57 = vrot.slane %v3246_v52, 1  ;;  %v984_v58 = vrot.slane %v3246_v52, 2  ;;  %v1178_v59 = vrot.slane %v3246_v52, 3  ;;  %v834_v60 = vrot.slane %v3248_v56, 1 }
 0x127   : > { %v728_v63 = vpop.f32.mrb[9].mxu1  ;;  %v640_v0 = vpop.f32.mrb[9].mxu0  ;;  %v1028_v2 = vrot.slane %v3248_v56, 2  ;;  %v1222_v3 = vrot.slane %v3248_v56, 3  ;;  %1044 = vrot.lane.b32.xlu1 %v981_v40, %s2981_s13  ;;  %850 = vrot.lane.b32.xlu0 %v787_v41, %s2979_s11 }
 0x128   : > { %v3258_v5 = vpop.f32.mrb[10].mxu1  ;;  %v3260_v6 = vpop.f32.mrb[10].mxu0  ;;  %v3269_v22 = vsel %vm782_vm3, %v832_v36, %v834_v60  ;;  %v3272_v23 = vsel %vm782_vm3, %v788_v32, %v790_v57  ;;  %v3275_v24 = vsel %vm1170_vm4, %v1176_v34, %v1178_v59  ;;  %v3278_v25 = vsel %vm976_vm5, %v982_v33, %v984_v58 }
 0x129   : > { %4578 = vst [vmem:[#allocation11_spill] sm:$0xff] %v3258_v5  ;;  %4579 = vst [vmem:[#allocation12_spill] sm:$0xff] %v3260_v6  ;;  %v836_v7 = vrot.slane %v3258_v5, 1  ;;  %v1030_v8 = vrot.slane %v3258_v5, 2  ;;  %v1224_v9 = vrot.slane %v3258_v5, 3  ;;  %v731_v10 = vpop.f32.mrb[11].mxu1  ;;  %v3281_v26 = vsel %vm976_vm5, %v1026_v38, %v1028_v2 }
 0x12a   : > { %v792_v16 = vrot.slane %v3260_v6, 1  ;;  %v643_v17 = vpop.f32.mrb[11].mxu0  ;;  %v986_v20 = vrot.slane %v3260_v6, 2  ;;  %v1180_v21 = vrot.slane %v3260_v6, 3  ;;  %v3284_v27 = vsel %vm1170_vm4, %v1220_v39, %v1222_v3 }
 0x12b   : > { %1282 = vrot.lane.b32.xlu1 %v1219_v42, %s2980_s12  ;;  %894 = vrot.lane.b32.xlu0 %v831_v43, %s2979_s11  ;;  %v3295_v32 = vsel %vm782_vm3, %v834_v60, %v836_v7  ;;  %v3298_v33 = vsel %vm976_vm5, %v1028_v2, %v1030_v8  ;;  %v3304_v35 = vsel %vm1170_vm4, %v1222_v3, %v1224_v9 }
 0x12c   : > { %v3289_v29 = vsel %vm976_vm5, %v984_v58, %v986_v20  ;;  %v3292_v30 = vsel %vm782_vm3, %v790_v57, %v792_v16  ;;  %v3301_v34 = vsel %vm1170_vm4, %v1178_v59, %v1180_v21 }
 0x12d   : > { %v3306_v36 = vpop.f32.mrb[12].mxu1  ;;  %v3308_v37 = vpop.f32.mrb[12].mxu0 }
 0x12e   : > { %4580 = vst [vmem:[#allocation13_spill] sm:$0xff] %v3306_v36  ;;  %4581 = vst [vmem:[#allocation14_spill] sm:$0xff] %v3308_v37  ;;  %v838_v38 = vrot.slane %v3306_v36, 1  ;;  %v1032_v39 = vrot.slane %v3306_v36, 2  ;;  %v1226_v40 = vrot.slane %v3306_v36, 3  ;;  %v794_v41 = vrot.slane %v3308_v37, 1 }
 0x12f   : > { %v648_v42 = vpop.f32.mrb[13].mxu0  ;;  %v736_v43 = vpop.f32.mrb[13].mxu1  ;;  %1238 = vrot.lane.b32.xlu0 %v1175_v44, %s2980_s12  ;;  %852 = vrot.lane.b32.xlu1 %v789_v45, %s2979_s11  ;;  %v988_v57 = vrot.slane %v3308_v37, 2  ;;  %v1182_v58 = vrot.slane %v3308_v37, 3 }
 0x130   : > { %v3318_v59 = vpop.f32.mrb[14].mxu0  ;;  %v3320_v60 = vpop.f32.mrb[14].mxu1  ;;  %v3332_v43 = vsel %vm782_vm3, %v792_v16, %v794_v41  ;;  %v3335_v11 = vsel %vm782_vm3, %v836_v7, %v838_v38  ;;  %v3338_v4 = vsel %vm976_vm5, %v1030_v8, %v1032_v39 }
 0x131   : > { %4582 = vst [vmem:[#allocation15_spill] sm:$0xff] %v3318_v59  ;;  %4583 = vst [vmem:[#allocation16_spill] sm:$0xff] %v3320_v60  ;;  %v796_v63 = vrot.slane %v3318_v59, 1  ;;  %v990_v0 = vrot.slane %v3318_v59, 2  ;;  %v1184_v2 = vrot.slane %v3318_v59, 3  ;;  %v651_v3 = vpop.f32.mrb[15].mxu0  ;;  %v3329_v42 = vsel %vm976_vm5, %v986_v20, %v988_v57 }
 0x132   : > { %v840_v10 = vrot.slane %v3320_v60, 1  ;;  %v739_v44 = vpop.f32.mrb[15].mxu1  ;;  %v1034_v45 = vrot.slane %v3320_v60, 2  ;;  %v1228_v17 = vrot.slane %v3320_v60, 3  ;;  %v3341_v3 = vsel %vm1170_vm4, %v1180_v21, %v1182_v58 }
 0x133   : > { %v3344_v44 = vsel %vm1170_vm4, %v1224_v9, %v1226_v40  ;;  %1088 = vrot.lane.b32.xlu0 %v3229_v46, %s2981_s13  ;;  %896 = vrot.lane.b32.xlu1 %v3232_v47, %s2979_s11  ;;  %v3351_v16 = vsel %vm976_vm5, %v988_v57, %v990_v0  ;;  %v3354_v7 = vsel %vm782_vm3, %v794_v41, %v796_v63 }
 0x134   : > { %v3357_v8 = vsel %vm782_vm3, %v838_v38, %v840_v10  ;;  %v3360_v20 = vsel %vm976_vm5, %v1032_v39, %v1034_v45  ;;  %v3363_v9 = vsel %vm1170_vm4, %v1182_v58, %v1184_v2  ;;  %v3366_v46 = vsel %vm1170_vm4, %v1226_v40, %v1228_v17 }
 0x135   : > { %v3368_v21 = vpop.f32.mrb[16].mxu0  ;;  %v3370_v47 = vpop.f32.mrb[16].mxu1 }
 0x136   : > { %4584 = vst [vmem:[#allocation17_spill] sm:$0xff] %v3368_v21  ;;  %4585 = vst [vmem:[#allocation18_spill] sm:$0xff] %v3370_v47  ;;  %v798_v57 = vrot.slane %v3368_v21, 1  ;;  %v992_v41 = vrot.slane %v3368_v21, 2  ;;  %v1186_v38 = vrot.slane %v3368_v21, 3  ;;  %v656_v1 = vpop.f32.mrb[17].mxu0 }
 0x137   : > { %v842_v39 = vrot.slane %v3370_v47, 1  ;;  %v744_v14 = vpop.f32.mrb[17].mxu1  ;;  %1046 = vrot.lane.b32.xlu0 %v3235_v48, %s2981_s13  ;;  %1240 = vrot.lane.b32.xlu1 %v3238_v49, %s2980_s12  ;;  %v3380_v40 = vpop.f32.mrb[18].mxu0  ;;  %v1036_v58 = vrot.slane %v3370_v47, 2  ;;  %v1230_v12 = vrot.slane %v3370_v47, 3 }
 0x138   : > { %4586 = vst [vmem:[#allocation19_spill] sm:$0xff] %v3380_v40  ;;  %v3384_v55 = vpop.f32.mrb[18].mxu1  ;;  %v800_v13 = vrot.slane %v3380_v40, 1  ;;  %v994_v1 = vrot.slane %v3380_v40, 2  ;;  %v1188_v14 = vrot.slane %v3380_v40, 3  ;;  %v659_v36 = vpop.f32.mrb[19].mxu0  ;;  %v3393_v59 = vsel %vm976_vm5, %v990_v0, %v992_v41 }
 0x139   : > { %v4546_v48 = vrot.slane %v3384_v55, 1  ;;  %v747_v21 = vpop.f32.mrb[19].mxu1  ;;  %v4545_v49 = vrot.slane %v3384_v55, 2  ;;  %v4544_v60 = vrot.slane %v3384_v55, 3  ;;  %v3396_v47 = vsel %vm782_vm3, %v796_v63, %v798_v57 }
 0x13a   : > { %v3399_v37 = vsel %vm782_vm3, %v840_v10, %v842_v39  ;;  %v3402_v5 = vsel %vm976_vm5, %v1034_v45, %v1036_v58  ;;  %v3405_v36 = vsel %vm1170_vm4, %v1184_v2, %v1186_v38  ;;  %v3408_v21 = vsel %vm1170_vm4, %v1228_v17, %v1230_v12 }
 0x13b   : > { %1284 = vrot.lane.b32.xlu0 %v3241_v50, %s2980_s12  ;;  %1090 = vrot.lane.b32.xlu1 %v3244_v51, %s2981_s13  ;;  %v3417_v63 = vsel %vm782_vm3, %v842_v39, %v4546_v48  ;;  %v3420_v0 = vsel %vm782_vm3, %v798_v57, %v800_v13  ;;  %v3423_v2 = vsel %vm1170_vm4, %v1186_v38, %v1188_v14 }
 0x13c   : > { %v3426_v10 = vsel %vm976_vm5, %v992_v41, %v994_v1  ;;  %v3431_v50 = vsel %vm976_vm5, %v1036_v58, %v4545_v49  ;;  %v3436_v51 = vsel %vm1170_vm4, %v1230_v12, %v4544_v60 }
 0x13d   : > { %v3438_v45 = vpop.f32.mrb[20].mxu0 }
 0x13e   : > { %4587 = vst [vmem:[#allocation20_spill] sm:$0xff] %v3438_v45  ;;  %v802_v17 = vrot.slane %v3438_v45, 1  ;;  %v996_v57 = vrot.slane %v3438_v45, 2  ;;  %v1190_v38 = vrot.slane %v3438_v45, 3  ;;  %v664_v41 = vpop.f32.mrb[21].mxu0 }
 0x13f   : > { %898 = vrot.lane.b32.xlu0 %v3269_v22, %s2979_s11  ;;  %854 = vrot.lane.b32.xlu1 %v3272_v23, %s2979_s11  ;;  %v3447_v39 = vpop.f32.mrb[22].mxu0 }
 0x140   : > { %4588 = vst [vmem:[#allocation21_spill] sm:$0xff] %v3447_v39  ;;  %v804_v12 = vrot.slane %v3447_v39, 1  ;;  %v998_v58 = vrot.slane %v3447_v39, 2  ;;  %v1192_v60 = vrot.slane %v3447_v39, 3  ;;  %v667_v49 = vpop.f32.mrb[23].mxu0  ;;  %v3453_v48 = vsel %vm1170_vm4, %v1188_v14, %v1190_v38 }
 0x141   : > { %v3456_v41 = vsel %vm782_vm3, %v800_v13, %v802_v17  ;;  %v3459_v22 = vsel %vm976_vm5, %v994_v1, %v996_v57 }
 0x142   : > { %v3462_v23 = vsel %vm782_vm3, %v802_v17, %v804_v12  ;;  %v3465_v45 = vsel %vm1170_vm4, %v1190_v38, %v1192_v60  ;;  %v3468_v40 = vsel %vm976_vm5, %v996_v57, %v998_v58 }
 0x143   : > { %1242 = vrot.lane.b32.xlu0 %v3275_v24, %s2980_s12  ;;  %1048 = vrot.lane.b32.xlu1 %v3278_v25, %s2981_s13 }
 0x145   : > { %v3474_v13 = vpop.f32.mrb[24].mxu0 }
 0x146   : > { %4589 = vst [vmem:[#allocation22_spill] sm:$0xff] %v3474_v13  ;;  %v806_v1 = vrot.slane %v3474_v13, 1  ;;  %v1000_v14 = vrot.slane %v3474_v13, 2  ;;  %v1194_v49 = vrot.slane %v3474_v13, 3  ;;  %v672_v17 = vpop.f32.mrb[25].mxu0 }
 0x147   : > { %1092 = vrot.lane.b32.xlu0 %v3281_v26, %s2981_s13  ;;  %1286 = vrot.lane.b32.xlu1 %v3284_v27, %s2980_s12  ;;  %v3483_v57 = vpop.f32.mrb[26].mxu0 }
 0x148   : > { %4590 = vst [vmem:[#allocation23_spill] sm:$0xff] %v3483_v57  ;;  %v808_v24 = vrot.slane %v3483_v57, 1  ;;  %v1002_v25 = vrot.slane %v3483_v57, 2  ;;  %v1196_v38 = vrot.slane %v3483_v57, 3  ;;  %v675_v39 = vpop.f32.mrb[27].mxu0  ;;  %v3489_v56 = vsel %vm1170_vm4, %v1192_v60, %v1194_v49 }
 0x149   : > { %v3492_v17 = vsel %vm782_vm3, %v804_v12, %v806_v1  ;;  %v3495_v26 = vsel %vm976_vm5, %v998_v58, %v1000_v14 }
 0x14a   : > { %v3498_v27 = vsel %vm782_vm3, %v806_v1, %v808_v24  ;;  %v3501_v13 = vsel %vm976_vm5, %v1000_v14, %v1002_v25  ;;  %v3504_v6 = vsel %vm1170_vm4, %v1194_v49, %v1196_v38 }
 0x14b   : > { %1050 = vrot.lane.b32.xlu1 %v3289_v29, %s2981_s13  ;;  %856 = vrot.lane.b32.xlu0 %v3292_v30, %s2979_s11 }
 0x14d   : > { %v3510_v60 = vpop.f32.mrb[28].mxu0 }
 0x14e   : > { %4591 = vst [vmem:[#allocation24_spill] sm:$0xff] %v3510_v60  ;;  %v810_v39 = vrot.slane %v3510_v60, 1  ;;  %v1004_v12 = vrot.slane %v3510_v60, 2  ;;  %v1198_v58 = vrot.slane %v3510_v60, 3  ;;  %v680_v1 = vpop.f32.mrb[29].mxu0 }
 0x14f   : > { %900 = vrot.lane.b32.xlu1 %v3295_v32, %s2979_s11  ;;  %1094 = vrot.lane.b32.xlu0 %v3298_v33, %s2981_s13  ;;  %v3519_v14 = vpop.f32.mrb[30].mxu0 }
 0x150   : > { %4592 = vst [vmem:[#allocation25_spill] sm:$0xff] %v3519_v14  ;;  %v812_v29 = vrot.slane %v3519_v14, 1  ;;  %v1006_v30 = vrot.slane %v3519_v14, 2  ;;  %v1200_v49 = vrot.slane %v3519_v14, 3  ;;  %v683_v57 = vpop.f32.mrb[31].mxu0  ;;  %v3525_v52 = vsel %vm976_vm5, %v1002_v25, %v1004_v12 }
 0x151   : > { %v3528_v1 = vsel %vm1170_vm4, %v1196_v38, %v1198_v58  ;;  %v3531_v32 = vsel %vm782_vm3, %v808_v24, %v810_v39 }
 0x152   : > { %v3534_v33 = vsel %vm782_vm3, %v810_v39, %v812_v29  ;;  %v3537_v60 = vsel %vm976_vm5, %v1004_v12, %v1006_v30  ;;  %v3540_v31 = vsel %vm1170_vm4, %v1198_v58, %v1200_v49 }
 0x153   : > { %1244 = vrot.lane.b32.xlu1 %v3301_v34, %s2980_s12  ;;  %1288 = vrot.lane.b32.xlu0 %v3304_v35, %s2980_s12 }
 0x155   : > { %v3546_v57 = vpop.f32.mrb[32].mxu0 }
 0x156   : > { %4593 = vst [vmem:[#allocation26_spill] sm:$0xff] %v3546_v57  ;;  %v814_v24 = vrot.slane %v3546_v57, 1  ;;  %v1008_v25 = vrot.slane %v3546_v57, 2  ;;  %v1202_v38 = vrot.slane %v3546_v57, 3  ;;  %v688_v39 = vpop.f32.mrb[33].mxu0 }
 0x157   : > { %1052 = vrot.lane.b32.xlu0 %v3329_v42, %s2981_s13  ;;  %858 = vrot.lane.b32.xlu1 %v3332_v43, %s2979_s11  ;;  %v3555_v12 = vpop.f32.mrb[34].mxu0 }
 0x158   : > { %4594 = vst [vmem:[#allocation27_spill] sm:$0xff] %v3555_v12  ;;  %v816_v34 = vrot.slane %v3555_v12, 1  ;;  %v1010_v35 = vrot.slane %v3555_v12, 2  ;;  %v1204_v58 = vrot.slane %v3555_v12, 3  ;;  %v691_v14 = vpop.f32.mrb[35].mxu0  ;;  %v3561_v19 = vsel %vm976_vm5, %v1006_v30, %v1008_v25 }
 0x159   : > { %v3564_v39 = vsel %vm1170_vm4, %v1200_v49, %v1202_v38  ;;  %v3567_v42 = vsel %vm782_vm3, %v812_v29, %v814_v24 }
 0x15a   : > { %v3570_v43 = vsel %vm976_vm5, %v1008_v25, %v1010_v35  ;;  %v3573_v57 = vsel %vm1170_vm4, %v1202_v38, %v1204_v58  ;;  %v3576_v15 = vsel %vm782_vm3, %v814_v24, %v816_v34 }
 0x15b   : > { %902 = vrot.lane.b32.xlu0 %v3335_v11, %s2979_s11  ;;  %1096 = vrot.lane.b32.xlu1 %v3338_v4, %s2981_s13 }
 0x15d   : > { %v3582_v14 = vpop.f32.mrb[36].mxu0 }
 0x15e   : > { %4595 = vst [vmem:[#allocation28_spill] sm:$0xff] %v3582_v14  ;;  %v818_v29 = vrot.slane %v3582_v14, 1  ;;  %v1012_v30 = vrot.slane %v3582_v14, 2  ;;  %v1206_v49 = vrot.slane %v3582_v14, 3  ;;  %v696_v25 = vpop.f32.mrb[37].mxu0 }
 0x15f   : > { %1246 = vrot.lane.b32.xlu0 %v3341_v3, %s2980_s12  ;;  %1290 = vrot.lane.b32.xlu1 %v3344_v44, %s2980_s12  ;;  %v3591_v24 = vpop.f32.mrb[38].mxu0 }
 0x160   : > { %4596 = vst [vmem:[#allocation29_spill] sm:$0xff] %v3591_v24  ;;  %v820_v11 = vrot.slane %v3591_v24, 1  ;;  %v1014_v4 = vrot.slane %v3591_v24, 2  ;;  %v1208_v38 = vrot.slane %v3591_v24, 3  ;;  %v699_v12 = vpop.f32.mrb[39].mxu0  ;;  %v3597_v28 = vsel %vm976_vm5, %v1010_v35, %v1012_v30 }
 0x161   : > { %v3600_v25 = vsel %vm782_vm3, %v816_v34, %v818_v29  ;;  %v3603_v3 = vsel %vm1170_vm4, %v1204_v58, %v1206_v49 }
 0x162   : > { %v3606_v44 = vsel %vm976_vm5, %v1012_v30, %v1014_v4  ;;  %v3609_v14 = vsel %vm1170_vm4, %v1206_v49, %v1208_v38  ;;  %v3612_v18 = vsel %vm782_vm3, %v818_v29, %v820_v11 }
 0x163   : > { %1054 = vrot.lane.b32.xlu1 %v3351_v16, %s2981_s13  ;;  %860 = vrot.lane.b32.xlu0 %v3354_v7, %s2979_s11 }
 0x165   : > { %v3618_v12 = vpop.f32.mrb[40].mxu0 }
 0x166   : > { %4597 = vst [vmem:[#allocation30_spill] sm:$0xff] %v3618_v12  ;;  %v822_v34 = vrot.slane %v3618_v12, 1  ;;  %v1016_v35 = vrot.slane %v3618_v12, 2  ;;  %v1210_v58 = vrot.slane %v3618_v12, 3  ;;  %v704_v30 = vpop.f32.mrb[41].mxu0 }
 0x167   : > { %904 = vrot.lane.b32.xlu1 %v3357_v8, %s2979_s11  ;;  %1098 = vrot.lane.b32.xlu0 %v3360_v20, %s2981_s13  ;;  %v3627_v29 = vpop.f32.mrb[42].mxu0 }
 0x168   : > { %v824_v16 = vrot.slane %v3627_v29, 1  ;;  %v1018_v7 = vrot.slane %v3627_v29, 2  ;;  %v1212_v49 = vrot.slane %v3627_v29, 3  ;;  %v707_v24 = vpop.f32.mrb[43].mxu0  ;;  %v3633_v62 = vsel %vm976_vm5, %v1014_v4, %v1016_v35 }
 0x169   : > { %v3636_v30 = vsel %vm782_vm3, %v820_v11, %v822_v34  ;;  %v3639_v8 = vsel %vm1170_vm4, %v1208_v38, %v1210_v58 }
 0x16a   : > { %v3644_v20 = vsel %vm976_vm5, %v1016_v35, %v1018_v7  ;;  %v3649_v12 = vsel %vm782_vm3, %v822_v34, %v824_v16  ;;  %v3654_v24 = vsel %vm1170_vm4, %v1210_v58, %v1212_v49 }
 0x16b   : > { %1248 = vrot.lane.b32.xlu1 %v3363_v9, %s2980_s12  ;;  %1292 = vrot.lane.b32.xlu0 %v3366_v46, %s2980_s12 }
 0x16f   : > { %1056 = vrot.lane.b32.xlu0 %v3393_v59, %s2981_s13  ;;  %862 = vrot.lane.b32.xlu1 %v3396_v47, %s2979_s11  ;;  %v2982_v59 = vmov 0.0   ;;  %v3685_v47 = vpop.permute.xlu1 %1488 }
 0x170   : > { %v846_v9 = vrot.slane %v2982_v59, 1  ;;  %v1040_v46 = vrot.slane %v2982_v59, 2 }
 0x173   : > { %906 = vrot.lane.b32.xlu0 %v3399_v37, %s2979_s11  ;;  %1100 = vrot.lane.b32.xlu1 %v3402_v5, %s2981_s13  ;;  %v4598_v5 = vrot.slane %v3384_v55, 1 }
 0x175   : > { %v847_v37 = vsel %vm782_vm3, %v4598_v5, %v846_v9 }
 0x177   : > { %1250 = vrot.lane.b32.xlu0 %v3405_v36, %s2980_s12  ;;  %1294 = vrot.lane.b32.xlu1 %v3408_v21, %s2980_s12  ;;  %v4599_v36 = vrot.slane %v3384_v55, 2 }
 0x179   : > { %v1041_v21 = vsel %vm976_vm5, %v4599_v36, %v1040_v46  ;;  %v4603_v36 = vld [vmem:[#allocation5_spill] sm:$0xff] }
 0x17b   : > { %908 = vrot.lane.b32.xlu0 %v3417_v63, %s2979_s11  ;;  %864 = vrot.lane.b32.xlu1 %v3420_v0, %s2979_s11  ;;  %v3696_v63 = vpop.permute.xlu0 %1558  ;;  %v3698_v0 = vpop.permute.xlu1 %1561 }
 0x17c   : > { %vm1563_vm7 = vcmp.eq.s32.totalorder %v3696_v63, 1  ;;  %vm1564_vm8 = vcmp.eq.s32.totalorder %v3698_v0, 1  ;;  %v1928_v0 = vld [vmem:[%s4524_s2 + $0x10] sm:$0xf] }
 0x17f   : > { %1252 = vrot.lane.b32.xlu0 %v3423_v2, %s2980_s12  ;;  %1058 = vrot.lane.b32.xlu1 %v3426_v10, %s2981_s13 }
 0x183   : > { %1102 = vrot.lane.b32.xlu0 %v3431_v50, %s2981_s13  ;;  %910 = vrot.lane.b32.xlu1 %v847_v37, %s2979_s11  ;;  %v4602_v37 = vrot.slane %v3166_v54, 2 }
 0x185   : > { %v1021_v46 = vsel %vm976_vm5, %v1018_v7, %v4602_v37 }
 0x187   : > { %1296 = vrot.lane.b32.xlu0 %v3436_v51, %s2980_s12  ;;  %1104 = vrot.lane.b32.xlu1 %v1041_v21, %s2981_s13 }
 0x18b   : > { %1254 = vrot.lane.b32.xlu1 %v3453_v48, %s2980_s12  ;;  %866 = vrot.lane.b32.xlu0 %v3456_v41, %s2979_s11 }
 0x18d   : > { %v3704_v2 = vpop.permute.xlu1 %892  ;;  %v3706_v10 = vpop.permute.xlu0 %848 }
 0x18e   : > { %v3828_v35 = vadd.f32 %v3704_v2, %v3166_v54 }
 0x18f   : > { %1060 = vrot.lane.b32.xlu0 %v3459_v22, %s2981_s13  ;;  %868 = vrot.lane.b32.xlu1 %v3462_v23, %s2979_s11 }
 0x191   : > { %v3712_v50 = vpop.permute.xlu1 %1236  ;;  %v1043_v51 = vpop.permute.xlu0 %1042 }
 0x193   : > { %1256 = vrot.lane.b32.xlu0 %v3465_v45, %s2980_s12  ;;  %1062 = vrot.lane.b32.xlu1 %v3468_v40, %s2981_s13 }
 0x195   : > { %v3718_v48 = vpop.permute.xlu1 %1086  ;;  %v3720_v41 = vpop.permute.xlu0 %1280 }
 0x197   : > { %1258 = vrot.lane.b32.xlu1 %v3489_v56, %s2980_s12  ;;  %870 = vrot.lane.b32.xlu0 %v3492_v17, %s2979_s11 }
 0x199   : > { %v3726_v22 = vpop.permute.xlu1 %1044  ;;  %v851_v23 = vpop.permute.xlu0 %850 }
 0x19b   : > { %1064 = vrot.lane.b32.xlu0 %v3495_v26, %s2981_s13  ;;  %872 = vrot.lane.b32.xlu1 %v3498_v27, %s2979_s11 }
 0x19d   : > { %v3732_v40 = vpop.permute.xlu1 %1282  ;;  %v895_v45 = vpop.permute.xlu0 %894 }
 0x19f   : > { %1066 = vrot.lane.b32.xlu0 %v3501_v13, %s2981_s13  ;;  %1068 = vrot.lane.b32.xlu1 %v3525_v52, %s2981_s13 }
 0x1a1   : > { %v1239_v56 = vpop.permute.xlu0 %1238  ;;  %v3738_v17 = vpop.permute.xlu1 %852 }
 0x1a2   : > { %v3855_v21 = vadd.f32 %v3738_v17, %v4603_v36 }
 0x1a3   : > { %1260 = vrot.lane.b32.xlu0 %v3504_v6, %s2980_s12  ;;  %1262 = vrot.lane.b32.xlu1 %v3528_v1, %s2980_s12 }
 0x1a5   : > { %v1089_v26 = vpop.permute.xlu0 %1088  ;;  %v3744_v27 = vpop.permute.xlu1 %896 }
 0x1a7   : > { %874 = vrot.lane.b32.xlu0 %v3531_v32, %s2979_s11  ;;  %876 = vrot.lane.b32.xlu1 %v3534_v33, %s2979_s11 }
 0x1a9   : > { %v1047_v13 = vpop.permute.xlu0 %1046  ;;  %v3750_v52 = vpop.permute.xlu1 %1240 }
 0x1ab   : > { %1070 = vrot.lane.b32.xlu0 %v3537_v60, %s2981_s13  ;;  %1072 = vrot.lane.b32.xlu1 %v3561_v19, %s2981_s13 }
 0x1ad   : > { %v3756_v6 = vpop.permute.xlu0 %1284  ;;  %v3758_v1 = vpop.permute.xlu1 %1090 }
 0x1af   : > { %1264 = vrot.lane.b32.xlu0 %v3540_v31, %s2980_s12  ;;  %1266 = vrot.lane.b32.xlu1 %v3564_v39, %s2980_s12 }
 0x1b1   : > { %v3764_v32 = vpop.permute.xlu0 %898  ;;  %v855_v33 = vpop.permute.xlu1 %854 }
 0x1b3   : > { %878 = vrot.lane.b32.xlu0 %v3567_v42, %s2979_s11  ;;  %1074 = vrot.lane.b32.xlu1 %v3570_v43, %s2981_s13 }
 0x1b5   : > { %v3770_v19 = vpop.permute.xlu0 %1242  ;;  %v1049_v60 = vpop.permute.xlu1 %1048 }
 0x1b7   : > { %1268 = vrot.lane.b32.xlu1 %v3573_v57, %s2980_s12  ;;  %880 = vrot.lane.b32.xlu0 %v3576_v15, %s2979_s11 }
 0x1b9   : > { %v1093_v31 = vpop.permute.xlu0 %1092  ;;  %v3776_v39 = vpop.permute.xlu1 %1286 }
 0x1bb   : > { %1076 = vrot.lane.b32.xlu0 %v3597_v28, %s2981_s13  ;;  %882 = vrot.lane.b32.xlu1 %v3600_v25, %s2979_s11  ;;  %v4600_v25 = vrot.slane %v3166_v54, 1 }
 0x1bd   : > { %v3782_v42 = vpop.permute.xlu1 %1050  ;;  %v3784_v43 = vpop.permute.xlu0 %856 }
 0x1bf   : > { %1270 = vrot.lane.b32.xlu0 %v3603_v3, %s2980_s12  ;;  %1078 = vrot.lane.b32.xlu1 %v3606_v44, %s2981_s13 }
 0x1c1   : > { %v3790_v15 = vpop.permute.xlu1 %900  ;;  %v3792_v57 = vpop.permute.xlu0 %1094 }
 0x1c3   : > { %1272 = vrot.lane.b32.xlu1 %v3609_v14, %s2980_s12  ;;  %884 = vrot.lane.b32.xlu0 %v3612_v18, %s2979_s11  ;;  %v827_v14 = vsel %vm782_vm3, %v824_v16, %v4600_v25  ;;  %v3815_v18 = vadd.f32 %v3706_v10, %v3164_v53  ;;  %v1160_v53 = vadd.f32 %v3718_v48, %v3828_v35  ;;  %v4604_v10 = vld [vmem:[#allocation7_spill] sm:$0xff] }
 0x1c5   : > { %v3798_v28 = vpop.permute.xlu1 %1244  ;;  %v3800_v11 = vpop.permute.xlu0 %1288  ;;  %v1138_v3 = vadd.f32 %v1043_v51, %v3815_v18  ;;  %v1354_v2 = vadd.f32 %v3720_v41, %v1160_v53  ;;  %v4605_v51 = vrot.slane %v3384_v55, 3 }
 0x1c7   : > { %1080 = vrot.lane.b32.xlu0 %v3633_v62, %s2981_s13  ;;  %886 = vrot.lane.b32.xlu1 %v3636_v30, %s2979_s11  ;;  %v3821_v62 = vadd.f32 %v851_v23, %v3172_v61  ;;  %v4601_v61 = vld [vmem:[#allocation4_spill] sm:$0xff]  ;;  %v1234_v30 = vrot.slane %v2982_v59, 3 }
 0x1c8   : > { %v3837_v58 = vadd.f32 %v895_v45, %v4601_v61 }
 0x1c9   : > { %v3806_v4 = vpop.permute.xlu0 %1052  ;;  %v859_v38 = vpop.permute.xlu1 %858  ;;  %v1139_v16 = vadd.f32 %v3726_v22, %v3821_v62  ;;  %v1235_v48 = vsel %vm1170_vm4, %v4605_v51, %v1234_v30  ;;  %v1140_v22 = vadd.f32 %v1047_v13, %v3855_v21 }
 0x1cb   : > { %1274 = vrot.lane.b32.xlu0 %v3639_v8, %s2980_s12  ;;  %890 = vrot.lane.b32.xlu1 %v827_v14, %s2979_s11  ;;  %v1332_v8 = vadd.f32 %v3712_v50, %v1138_v3  ;;  %v3862_v50 = vadd.f32 %v855_v33, %v4604_v10  ;;  %v4608_v33 = vld [vmem:[#allocation6_spill] sm:$0xff]  ;;  %v4609_v14 = vld [vmem:[#allocation8_spill] sm:$0xff] }
 0x1cc   : > { %v3881_v25 = vadd.f32 %v3744_v27, %v4608_v33  ;;  %v3886_v3 = vadd.f32 %v3764_v32, %v4609_v14  ;;  %v1334_v27 = vadd.f32 %v3750_v52, %v1140_v22  ;;  %v4612_v52 = vmov 1   ;;  %v4614_v10 = vld [vmem:[#allocation10_spill] sm:$0xff] }
 0x1cd   : > { %v903_v44 = vpop.permute.xlu0 %902  ;;  %v3824_v34 = vpop.permute.xlu1 %1096  ;;  %v1491_v7 = vadd.f32 %v3685_v47, %v1332_v8  ;;  %v1141_v13 = vadd.f32 %v1049_v60, %v3862_v50  ;;  %v3917_v51 = vadd.f32 %v3790_v15, %v4614_v10 }
 0x1ce   : > { %v1163_v61 = vadd.f32 %v1093_v31, %v3886_v3 }
 0x1cf   : > { %1082 = vrot.lane.b32.xlu1 %v3644_v20, %s2981_s13  ;;  %888 = vrot.lane.b32.xlu0 %v3649_v12, %s2979_s11  ;;  %v1333_v20 = vadd.f32 %v1239_v56, %v1139_v16  ;;  %v1161_v12 = vadd.f32 %v1089_v26, %v3837_v58  ;;  %v4607_v56 = vld [vmem:[#allocation3_spill] sm:$0xff]  ;;  %v1523_v32 = vmax.f32 %v1491_v7, 0.0 }
 0x1d0   : > { %vm1368_vm6 = vcmp.lt.s32.totalorder %v4607_v56, 15 }
 0x1d1   : > { %v3843_v9 = vpop.permute.xlu0 %1246  ;;  %v3845_v5 = vpop.permute.xlu1 %1290  ;;  %v1492_v17 = vadd.f32 %v3685_v47, %v1333_v20  ;;  %v1355_v26 = vadd.f32 %v3732_v40, %v1161_v12  ;;  %v4610_v40 = vmov 0   ;;  %v1335_v20 = vadd.f32 %v3770_v19, %v1141_v13  ;;  %v4611_v12 = vld [vmem:[#allocation9_spill] sm:$0xff] }
 0x1d2   : > { %v1439_v53 = vsel %vm1368_vm6, 1, %v4610_v40  ;;  %v1357_v19 = vadd.f32 %v3776_v39, %v1163_v61  ;;  %v1565_v7 = vsel %vm1563_vm7, %v1523_v32, 0.0  ;;  %v1164_v13 = vadd.f32 %v3792_v57, %v3917_v51  ;;  %v4617_v57 = vld [vmem:[#allocation15_spill] sm:$0xff] }
 0x1d3   : > { %1276 = vrot.lane.b32.xlu1 %v3654_v24, %s2980_s12  ;;  %1084 = vrot.lane.b32.xlu0 %v1021_v46, %s2981_s13  ;;  %v4606_v24 = vrot.slane %v3166_v54, 3  ;;  %v1513_v54 = vadd.f32 %v3685_v47, %v1354_v2  ;;  %v1524_v30 = vmax.f32 %v1492_v17, 0.0  ;;  %v1514_v8 = vadd.f32 %v3685_v47, %v1355_v26  ;;  %v4613_v46 = vld [vmem:[#allocation12_spill] sm:$0xff] }
 0x1d4   : > { %v3911_v36 = vadd.f32 %v859_v38, %v4613_v46  ;;  %v1493_v2 = vadd.f32 %v3685_v47, %v1334_v27  ;;  %v1494_v22 = vadd.f32 %v3685_v47, %v1335_v20  ;;  %v1516_v33 = vadd.f32 %v3685_v47, %v1357_v19  ;;  %v4616_v27 = vld [vmem:[#allocation14_spill] sm:$0xff] }
 0x1d5   : > { %v3869_v23 = vpop.permute.xlu1 %1054  ;;  %v861_v45 = vpop.permute.xlu0 %860  ;;  %v1215_v41 = vsel %vm1170_vm4, %v1212_v49, %v4606_v24  ;;  %v1162_v49 = vadd.f32 %v3758_v1, %v3881_v25  ;;  %v3905_v1 = vadd.f32 %v3784_v43, %v4611_v12  ;;  %v1545_v31 = vmax.f32 %v1513_v54, 0.0 }
 0x1d6   : > { %v1566_v38 = vsel %vm1564_vm8, %v1524_v30, 0.0  ;;  %v1143_v17 = vadd.f32 %v3806_v4, %v3911_v36  ;;  %v1525_v26 = vmax.f32 %v1493_v2, 0.0  ;;  %v3948_v61 = vadd.f32 %v861_v45, %v4616_v27 }
 0x1d7   : > { %1298 = vrot.lane.b32.xlu1 %v1235_v48, %s2980_s12  ;;  %1278 = vrot.lane.b32.xlu0 %v1215_v41, %s2980_s12  ;;  %v1356_v37 = vadd.f32 %v3756_v6, %v1162_v49  ;;  %v4615_v6 = vld [vmem:[#allocation11_spill] sm:$0xff]  ;;  %v1546_v41 = vmax.f32 %v1514_v8, 0.0  ;;  %v1142_v39 = vadd.f32 %v3782_v42, %v3905_v1  ;;  %v1548_v30 = vmax.f32 %v1516_v33, 0.0 }
 0x1d8   : > { %v3925_v24 = vadd.f32 %v903_v44, %v4615_v6  ;;  %v1587_v44 = vsel %vm1563_vm7, %v1545_v31, 0.0  ;;  %v1337_v40 = vadd.f32 %v3843_v9, %v1143_v17  ;;  %v1358_v9 = vadd.f32 %v3800_v11, %v1164_v13  ;;  %v4618_v31 = vld [vmem:[#allocation16_spill] sm:$0xff] }
 0x1d9   : > { %v3896_v60 = vpop.permute.xlu1 %904  ;;  %v3898_v16 = vpop.permute.xlu0 %1098  ;;  %v1515_v15 = vadd.f32 %v3685_v47, %v1356_v37  ;;  %v1336_v42 = vadd.f32 %v3798_v28, %v1142_v39  ;;  %v1588_v4 = vsel %vm1564_vm8, %v1546_v41, 0.0  ;;  %v1567_v12 = vsel %vm1563_vm7, %v1525_v26, 0.0 }
 0x1da   : > { %v1165_v49 = vadd.f32 %v3824_v34, %v3925_v24  ;;  %v1496_v45 = vadd.f32 %v3685_v47, %v1337_v40  ;;  %v1144_v2 = vadd.f32 %v3869_v23, %v3948_v61  ;;  %v1590_v23 = vsel %vm1564_vm8, %v1548_v30, 0.0 }
 0x1db   : > { %1444 = vperm.xlu1 %2882, %v1439_v53   ;;  %1441 = vperm.xlu0 %2881, %v4612_v52   ;;  %v1526_v53 = vmax.f32 %v1494_v22, 0.0  ;;  %v1547_v32 = vmax.f32 %v1515_v15, 0.0  ;;  %v1495_v34 = vadd.f32 %v3685_v47, %v1336_v42 }
 0x1dc   : > { %v1359_v52 = vadd.f32 %v3845_v5, %v1165_v49  ;;  %v1528_v41 = vmax.f32 %v1496_v45, 0.0 }
 0x1dd   : > { %v1249_v43 = vpop.permute.xlu1 %1248  ;;  %v3919_v48 = vpop.permute.xlu0 %1292  ;;  %v1568_v46 = vsel %vm1564_vm8, %v1526_v53, 0.0  ;;  %v1589_v5 = vsel %vm1563_vm7, %v1547_v32, 0.0  ;;  %v1527_v10 = vmax.f32 %v1495_v34, 0.0 }
 0x1de   : > { %v1338_v22 = vadd.f32 %v1249_v43, %v1144_v2  ;;  %v1518_v39 = vadd.f32 %v3685_v47, %v1359_v52  ;;  %v1570_v40 = vsel %vm1564_vm8, %v1528_v41, 0.0 }
 0x1df   : > { %1631 = vrot.lane.b32.xlu1 %v1566_v38, %s2979_s11  ;;  %1629 = vrot.lane.b32.xlu0 %v1565_v7, %s2979_s11  ;;  %v1517_v7 = vadd.f32 %v3685_v47, %v1358_v9  ;;  %v1569_v13 = vsel %vm1563_vm7, %v1527_v10, 0.0 }
 0x1e0   : > { %v1497_v26 = vadd.f32 %v3685_v47, %v1338_v22  ;;  %v1550_v42 = vmax.f32 %v1518_v39, 0.0 }
 0x1e1   : > { %v1057_v14 = vpop.permute.xlu0 %1056  ;;  %v863_v54 = vpop.permute.xlu1 %862 }
 0x1e2   : > { %v3953_v28 = vadd.f32 %v863_v54, %v4617_v57  ;;  %v4619_v54 = vld [vmem:[#allocation18_spill] sm:$0xff]  ;;  %v1529_v27 = vmax.f32 %v1497_v26, 0.0  ;;  %v1592_v9 = vsel %vm1564_vm8, %v1550_v42, 0.0 }
 0x1e3   : > { %1675 = vrot.lane.b32.xlu1 %v1588_v4, %s2979_s11  ;;  %1673 = vrot.lane.b32.xlu0 %v1587_v44, %s2979_s11  ;;  %v1549_v44 = vmax.f32 %v1517_v7, 0.0  ;;  %v4620_v4 = vld [vmem:[#allocation17_spill] sm:$0xff] }
 0x1e4   : > { %v1145_v19 = vadd.f32 %v1057_v14, %v3953_v28  ;;  %v1571_v52 = vsel %vm1563_vm7, %v1529_v27, 0.0 }
 0x1e5   : > { %v907_v8 = vpop.permute.xlu0 %906  ;;  %v1101_v20 = vpop.permute.xlu1 %1100 }
 0x1e6   : > { %v3962_v37 = vadd.f32 %v907_v8, %v4618_v31  ;;  %v1591_v8 = vsel %vm1563_vm7, %v1549_v44, 0.0 }
 0x1e7   : > { %1635 = vrot.lane.b32.xlu1 %v1568_v46, %s2979_s11  ;;  %1633 = vrot.lane.b32.xlu0 %v1567_v12, %s2979_s11 }
 0x1e8   : > { %v1167_v11 = vadd.f32 %v1101_v20, %v3962_v37 }
 0x1e9   : > { %v1251_v6 = vpop.permute.xlu0 %1250  ;;  %v1295_v38 = vpop.permute.xlu1 %1294 }
 0x1ea   : > { %v1339_v15 = vadd.f32 %v1251_v6, %v1145_v19  ;;  %v3978_v17 = vadd.f32 %v1295_v38, %v1167_v11 }
 0x1eb   : > { %1679 = vrot.lane.b32.xlu1 %v1590_v23, %s2979_s11  ;;  %1677 = vrot.lane.b32.xlu0 %v1589_v5, %s2979_s11  ;;  %v4621_v23 = vld [vmem:[#allocation19_spill] sm:$0xff] }
 0x1ec   : > { %v1498_v14 = vadd.f32 %v3685_v47, %v1339_v15 }
 0x1ed   : > { %v909_v33 = vpop.permute.xlu0 %908  ;;  %v865_v43 = vpop.permute.xlu1 %864 }
 0x1ee   : > { %v3987_v49 = vadd.f32 %v909_v33, %v4619_v54  ;;  %v3994_v53 = vadd.f32 %v865_v43, %v4620_v4  ;;  %v1530_v30 = vmax.f32 %v1498_v14, 0.0  ;;  %v4622_v33 = vld [vmem:[#allocation20_spill] sm:$0xff] }
 0x1ef   : > { %1639 = vrot.lane.b32.xlu1 %v1570_v40, %s2979_s11  ;;  %1637 = vrot.lane.b32.xlu0 %v1569_v13, %s2979_s11 }
 0x1f0   : > { %v1572_v11 = vsel %vm1564_vm8, %v1530_v30, 0.0 }
 0x1f1   : > { %v1253_v57 = vpop.permute.xlu0 %1252  ;;  %v1059_v32 = vpop.permute.xlu1 %1058 }
 0x1f2   : > { %v1146_v34 = vadd.f32 %v1059_v32, %v3994_v53 }
 0x1f3   : > { %1683 = vrot.lane.b32.xlu1 %v1592_v9, %s2979_s11  ;;  %1681 = vrot.lane.b32.xlu0 %v1591_v8, %s2979_s11  ;;  %v4623_v9 = vld [vmem:[#allocation21_spill] sm:$0xff] }
 0x1f4   : > { %v1340_v20 = vadd.f32 %v1253_v57, %v1146_v34 }
 0x1f5   : > { %v1103_v12 = vpop.permute.xlu0 %1102  ;;  %v911_v45 = vpop.permute.xlu1 %910 }
 0x1f6   : > { %v1499_v31 = vadd.f32 %v3685_v47, %v1340_v20  ;;  %v1168_v46 = vadd.f32 %v1103_v12, %v3987_v49  ;;  %v4008_v2 = vadd.f32 %v911_v45, %v3384_v55 }
 0x1f7   : > { %1643 = vrot.lane.b32.xlu1 %v1572_v11, %s2979_s11  ;;  %1641 = vrot.lane.b32.xlu0 %v1571_v52, %s2979_s11 }
 0x1f8   : > { %v1531_v19 = vmax.f32 %v1499_v31, 0.0 }
 0x1f9   : > { %v1297_v5 = vpop.permute.xlu0 %1296  ;;  %v1105_v10 = vpop.permute.xlu1 %1104 }
 0x1fa   : > { %v4014_v7 = vadd.f32 %v1297_v5, %v1168_v46  ;;  %v4017_v22 = vadd.f32 %v1105_v10, %v4008_v2  ;;  %v1573_v6 = vsel %vm1563_vm7, %v1531_v19, 0.0  ;;  %v4624_v5 = vld [vmem:[#allocation22_spill] sm:$0xff] }
 0x1fb   : > { %1645 = vrot.lane.b32.xlu0 %v1573_v6, %s2979_s11 }
 0x1fd   : > { %v1255_v55 = vpop.permute.xlu1 %1254  ;;  %v867_v38 = vpop.permute.xlu0 %866 }
 0x1fe   : > { %v4023_v41 = vadd.f32 %v867_v38, %v4621_v23 }
 0x201   : > { %v1061_v39 = vpop.permute.xlu0 %1060  ;;  %v869_v15 = vpop.permute.xlu1 %868 }
 0x202   : > { %v1147_v44 = vadd.f32 %v1061_v39, %v4023_v41  ;;  %v4027_v43 = vadd.f32 %v869_v15, %v4622_v33 }
 0x204   : > { %v1341_v26 = vadd.f32 %v1255_v55, %v1147_v44 }
 0x205   : > { %v1257_v13 = vpop.permute.xlu0 %1256  ;;  %v1063_v42 = vpop.permute.xlu1 %1062 }
 0x206   : > { %v1500_v14 = vadd.f32 %v3685_v47, %v1341_v26  ;;  %v1148_v54 = vadd.f32 %v1063_v42, %v4027_v43  ;;  %v4625_v42 = vld [vmem:[#allocation23_spill] sm:$0xff] }
 0x208   : > { %v1532_v40 = vmax.f32 %v1500_v14, 0.0  ;;  %v1342_v4 = vadd.f32 %v1257_v13, %v1148_v54 }
 0x209   : > { %v1259_v27 = vpop.permute.xlu1 %1258  ;;  %v871_v57 = vpop.permute.xlu0 %870 }
 0x20a   : > { %v1501_v32 = vadd.f32 %v3685_v47, %v1342_v4  ;;  %v1574_v30 = vsel %vm1564_vm8, %v1532_v40, 0.0  ;;  %v4036_v8 = vadd.f32 %v871_v57, %v4623_v9 }
 0x20b   : > { %1647 = vrot.lane.b32.xlu1 %v1574_v30, %s2979_s11 }
 0x20c   : > { %v1533_v34 = vmax.f32 %v1501_v32, 0.0  ;;  %v4626_v32 = vld [vmem:[#allocation24_spill] sm:$0xff] }
 0x20d   : > { %v1065_v20 = vpop.permute.xlu0 %1064  ;;  %v873_v12 = vpop.permute.xlu1 %872 }
 0x20e   : > { %v1149_v45 = vadd.f32 %v1065_v20, %v4036_v8  ;;  %v1575_v52 = vsel %vm1563_vm7, %v1533_v34, 0.0  ;;  %v4044_v10 = vadd.f32 %v873_v12, %v4624_v5 }
 0x20f   : > { %1649 = vrot.lane.b32.xlu0 %v1575_v52, %s2979_s11 }
 0x210   : > { %v1343_v31 = vadd.f32 %v1259_v27, %v1149_v45 }
 0x211   : > { %v1067_v46 = vpop.permute.xlu0 %1066  ;;  %v1069_v11 = vpop.permute.xlu1 %1068 }
 0x212   : > { %v1502_v19 = vadd.f32 %v3685_v47, %v1343_v31  ;;  %v1150_v55 = vadd.f32 %v1067_v46, %v4044_v10 }
 0x214   : > { %v1534_v6 = vmax.f32 %v1502_v19, 0.0 }
 0x215   : > { %v1261_v38 = vpop.permute.xlu0 %1260  ;;  %v1263_v23 = vpop.permute.xlu1 %1262 }
 0x216   : > { %v1344_v39 = vadd.f32 %v1261_v38, %v1150_v55  ;;  %v1576_v15 = vsel %vm1564_vm8, %v1534_v6, 0.0  ;;  %v4627_v6 = vld [vmem:[#allocation25_spill] sm:$0xff] }
 0x217   : > { %1651 = vrot.lane.b32.xlu1 %v1576_v15, %s2979_s11 }
 0x218   : > { %v1503_v44 = vadd.f32 %v3685_v47, %v1344_v39 }
 0x219   : > { %v875_v26 = vpop.permute.xlu0 %874  ;;  %v877_v33 = vpop.permute.xlu1 %876 }
 0x21a   : > { %v1535_v13 = vmax.f32 %v1503_v44, 0.0  ;;  %v4052_v14 = vadd.f32 %v875_v26, %v4625_v42  ;;  %v4059_v30 = vadd.f32 %v877_v33, %v4626_v32  ;;  %v4628_v26 = vld [vmem:[#allocation26_spill] sm:$0xff] }
 0x21c   : > { %v1151_v54 = vadd.f32 %v1069_v11, %v4052_v14  ;;  %v1577_v40 = vsel %vm1563_vm7, %v1535_v13, 0.0 }
 0x21d   : > { %v1071_v4 = vpop.permute.xlu0 %1070  ;;  %v1073_v27 = vpop.permute.xlu1 %1072  ;;  %1653 = vrot.lane.b32.xlu0 %v1577_v40, %s2979_s11 }
 0x21e   : > { %v1345_v57 = vadd.f32 %v1263_v23, %v1151_v54  ;;  %v1152_v34 = vadd.f32 %v1071_v4, %v4059_v30 }
 0x220   : > { %v1504_v9 = vadd.f32 %v3685_v47, %v1345_v57  ;;  %v4629_v57 = vld [vmem:[#allocation27_spill] sm:$0xff] }
 0x221   : > { %v1265_v20 = vpop.permute.xlu0 %1264  ;;  %v1267_v12 = vpop.permute.xlu1 %1266 }
 0x222   : > { %v1346_v45 = vadd.f32 %v1265_v20, %v1152_v34  ;;  %v1536_v52 = vmax.f32 %v1504_v9, 0.0 }
 0x224   : > { %v1505_v31 = vadd.f32 %v3685_v47, %v1346_v45  ;;  %v1578_v46 = vsel %vm1564_vm8, %v1536_v52, 0.0 }
 0x225   : > { %v879_v11 = vpop.permute.xlu0 %878  ;;  %v1075_v19 = vpop.permute.xlu1 %1074  ;;  %1655 = vrot.lane.b32.xlu1 %v1578_v46, %s2979_s11 }
 0x226   : > { %v1537_v5 = vmax.f32 %v1505_v31, 0.0  ;;  %v4068_v55 = vadd.f32 %v879_v11, %v4627_v6 }
 0x228   : > { %v1153_v38 = vadd.f32 %v1073_v27, %v4068_v55  ;;  %v1579_v23 = vsel %vm1563_vm7, %v1537_v5, 0.0 }
 0x229   : > { %v1269_v39 = vpop.permute.xlu1 %1268  ;;  %v881_v15 = vpop.permute.xlu0 %880  ;;  %1657 = vrot.lane.b32.xlu0 %v1579_v23, %s2979_s11 }
 0x22a   : > { %v1347_v44 = vadd.f32 %v1267_v12, %v1153_v38  ;;  %v4075_v33 = vadd.f32 %v881_v15, %v4628_v26  ;;  %v4630_v38 = vld [vmem:[#allocation28_spill] sm:$0xff] }
 0x22c   : > { %v1154_v13 = vadd.f32 %v1075_v19, %v4075_v33  ;;  %v1506_v42 = vadd.f32 %v3685_v47, %v1347_v44 }
 0x22d   : > { %v1077_v54 = vpop.permute.xlu0 %1076  ;;  %v883_v40 = vpop.permute.xlu1 %882 }
 0x22e   : > { %v1348_v4 = vadd.f32 %v1269_v39, %v1154_v13  ;;  %v4080_v27 = vadd.f32 %v883_v40, %v4629_v57  ;;  %v1538_v32 = vmax.f32 %v1506_v42, 0.0  ;;  %v4631_v42 = vld [vmem:[#allocation29_spill] sm:$0xff] }
 0x22f   : > { %v4632_v40 = vld [vmem:[#allocation13_spill] sm:$0xff] }
 0x230   : > { %v1155_v34 = vadd.f32 %v1077_v54, %v4080_v27  ;;  %v1580_v9 = vsel %vm1564_vm8, %v1538_v32, 0.0  ;;  %v1507_v20 = vadd.f32 %v3685_v47, %v1348_v4  ;;  %v4103_v4 = vadd.f32 %v3896_v60, %v4632_v40 }
 0x231   : > { %v1271_v12 = vpop.permute.xlu0 %1270  ;;  %v1079_v45 = vpop.permute.xlu1 %1078  ;;  %1659 = vrot.lane.b32.xlu1 %v1580_v9, %s2979_s11 }
 0x232   : > { %v1349_v52 = vadd.f32 %v1271_v12, %v1155_v34  ;;  %v1539_v31 = vmax.f32 %v1507_v20, 0.0 }
 0x234   : > { %v1508_v46 = vadd.f32 %v3685_v47, %v1349_v52  ;;  %v1581_v11 = vsel %vm1563_vm7, %v1539_v31, 0.0 }
 0x235   : > { %v1273_v19 = vpop.permute.xlu1 %1272  ;;  %v885_v5 = vpop.permute.xlu0 %884  ;;  %1661 = vrot.lane.b32.xlu0 %v1581_v11, %s2979_s11 }
 0x236   : > { %v1540_v6 = vmax.f32 %v1508_v46, 0.0  ;;  %v4092_v23 = vadd.f32 %v885_v5, %v4630_v38 }
 0x238   : > { %v1156_v39 = vadd.f32 %v1079_v45, %v4092_v23  ;;  %v1582_v15 = vsel %vm1564_vm8, %v1540_v6, 0.0  ;;  %v1166_v45 = vadd.f32 %v3898_v16, %v4103_v4 }
 0x239   : > { %v1081_v44 = vpop.permute.xlu0 %1080  ;;  %v887_v26 = vpop.permute.xlu1 %886  ;;  %1663 = vrot.lane.b32.xlu1 %v1582_v15, %s2979_s11 }
 0x23a   : > { %v1350_v13 = vadd.f32 %v1273_v19, %v1156_v39  ;;  %v4099_v54 = vadd.f32 %v887_v26, %v4631_v42  ;;  %v4633_v19 = vld [vmem:[#allocation30_spill] sm:$0xff]  ;;  %v1360_v6 = vadd.f32 %v3919_v48, %v1166_v45  ;;  %v1521_v45 = vadd.f32 %v3685_v47, %v4014_v7 }
 0x23c   : > { %v1157_v57 = vadd.f32 %v1081_v44, %v4099_v54  ;;  %v1509_v32 = vadd.f32 %v3685_v47, %v1350_v13  ;;  %v1519_v13 = vadd.f32 %v3685_v47, %v1360_v6 }
 0x23d   : > { %v1275_v34 = vpop.permute.xlu0 %1274  ;;  %v891_v9 = vpop.permute.xlu1 %890 }
 0x23e   : > { %v1351_v20 = vadd.f32 %v1275_v34, %v1157_v57  ;;  %v1541_v12 = vmax.f32 %v1509_v32, 0.0  ;;  %v4122_v44 = vadd.f32 %v891_v9, %v3627_v29 }
 0x240   : > { %v1510_v52 = vadd.f32 %v3685_v47, %v1351_v20  ;;  %v1583_v31 = vsel %vm1563_vm7, %v1541_v12, 0.0  ;;  %v1551_v20 = vmax.f32 %v1519_v13, 0.0  ;;  %v1520_v12 = vadd.f32 %v3685_v47, %v3978_v17 }
 0x241   : > { %v1083_v46 = vpop.permute.xlu1 %1082  ;;  %1665 = vrot.lane.b32.xlu0 %v1583_v31, %s2979_s11  ;;  %v889_v60 = vpop.permute.xlu0 %888 }
 0x242   : > { %v1542_v11 = vmax.f32 %v1510_v52, 0.0  ;;  %v4114_v5 = vadd.f32 %v889_v60, %v4633_v19  ;;  %v1552_v60 = vmax.f32 %v1520_v12, 0.0 }
 0x244   : > { %v1584_v38 = vsel %vm1564_vm8, %v1542_v11, 0.0  ;;  %v1158_v16 = vadd.f32 %v1083_v46, %v4114_v5  ;;  %v1593_v46 = vsel %vm1563_vm7, %v1551_v20, 0.0  ;;  %v1553_v11 = vmax.f32 %v1521_v45, 0.0 }
 0x245   : > { %1667 = vrot.lane.b32.xlu1 %v1584_v38, %s2979_s11  ;;  %v1277_v39 = vpop.permute.xlu1 %1276  ;;  %v1085_v15 = vpop.permute.xlu0 %1084  ;;  %v1594_v6 = vsel %vm1564_vm8, %v1552_v60, 0.0  ;;  %v4150_v38 = vld [vmem:[%s4526_s4] ss:$0 sm:$0xff] }
 0x246   : > { %v1352_v26 = vadd.f32 %v1277_v39, %v1158_v16  ;;  %v1159_v40 = vadd.f32 %v1085_v15, %v4122_v44  ;;  %v1595_v19 = vsel %vm1563_vm7, %v1553_v11, 0.0  ;;  %v1375_v16 = vadd.f32 %v4150_v38, %v3821_v62  ;;  %v1926_v39 = vld [vmem:[%s4524_s2] sm:$0xff]  ;;  %v1927_v15 = vld [vmem:[%s4524_s2 + $0x8] sm:$0xff] }
 0x247   : > { %v1396_v62 = vadd.f32 %v4150_v38, %v3828_v35  ;;  %v1376_v12 = vadd.f32 %v4150_v38, %v3855_v21 }
 0x248   : > { %v1511_v42 = vadd.f32 %v3685_v47, %v1352_v26  ;;  %v2815_v26 = vpack.c.bf16 %v1927_v15, %v1926_v39  ;;  %v1398_v39 = vadd.f32 %v4150_v38, %v3881_v25  ;;  %v1379_v25 = vadd.f32 %v4150_v38, %v3911_v36 }
 0x249   : > { %v1299_v48 = vpop.permute.xlu1 %1298  ;;  %v1279_v57 = vpop.permute.xlu0 %1278  ;;  %v1428_v20 = vmax.f32 %v1396_v62, 0.0 }
 0x24a   : > { %v1543_v32 = vmax.f32 %v1511_v42, 0.0  ;;  %v1353_v34 = vadd.f32 %v1279_v57, %v1159_v40  ;;  %v1363_v29 = vadd.f32 %v1299_v48, %v4017_v22  ;;  %2816 = vmatprep.subr.bf16.mxu1 %v2815_v26  ;;  %v1407_v40 = vmax.f32 %v1375_v16, 0.0 }
 0x24b   : > { %v1397_v48 = vadd.f32 %v4150_v38, %v3837_v58  ;;  %2818 = vmatpush3.bf16.msra.mxu1 %v2815_v26 }
 0x24c   : > { %v1512_v9 = vadd.f32 %v3685_v47, %v1353_v34  ;;  %v1585_v52 = vsel %vm1563_vm7, %v1543_v32, 0.0  ;;  %v1522_v17 = vadd.f32 %v3685_v47, %v1363_v29  ;;  %v1374_v47 = vadd.f32 %v4150_v38, %v3815_v18  ;;  %2760 = vmatprep.subr.msk.mxu1 %vm584_vm2, %v1928_v0 }
 0x24d   : > { %1669 = vrot.lane.b32.xlu0 %v1585_v52, %s2979_s11  ;;  %v1429_v29 = vmax.f32 %v1397_v48, 0.0 }
 0x24e   : > { %v1544_v31 = vmax.f32 %v1512_v9, 0.0  ;;  %v1554_v22 = vmax.f32 %v1522_v17, 0.0  ;;  %v1406_v42 = vmax.f32 %v1374_v47, 0.0  ;;  %v1377_v9 = vadd.f32 %v4150_v38, %v3862_v50 }
 0x24f   : > { %2761 = vmatpush3.msk.msra.mxu1 %vm584_vm2, %v1928_v0  ;;  %v1378_v0 = vadd.f32 %v4150_v38, %v3905_v1 }
 0x250   : > { %v1586_v7 = vsel %vm1564_vm8, %v1544_v31, 0.0  ;;  %v1596_v63 = vsel %vm1564_vm8, %v1554_v22, 0.0  ;;  %v1409_v47 = vmax.f32 %v1377_v9, 0.0 }
 0x251   : > { %1685 = vrot.lane.b32.xlu0 %v1593_v46, %s2979_s11  ;;  %1671 = vrot.lane.b32.xlu1 %v1586_v7, %s2979_s11  ;;  %v1408_v7 = vmax.f32 %v1376_v12, 0.0 }
 0x255   : > { %1689 = vrot.lane.b32.xlu0 %v1595_v19, %s2979_s11  ;;  %1687 = vrot.lane.b32.xlu1 %v1594_v6, %s2979_s11  ;;  %v1399_v6 = vadd.f32 %v4150_v38, %v3886_v3 }
 0x259   : > { %1691 = vrot.lane.b32.xlu1 %v1596_v63, %s2979_s11 }
 0x25a   : > { %v4167_v13 = vpop.permute.xlu1 %1444  ;;  %v4169_v18 = vpop.permute.xlu0 %1441 }
 0x25b   : > { %vm1447_vm9 = vcmp.eq.s32.totalorder %v4167_v13, 1  ;;  %vm1446_vm10 = vcmp.eq.s32.totalorder %v4169_v18, 1 }
 0x25c   : > { %v1449_v57 = vsel %vm1447_vm9, %v1407_v40, 0.0  ;;  %v1448_v35 = vsel %vm1446_vm10, %v1406_v42, 0.0  ;;  %v1471_v60 = vsel %vm1447_vm9, %v1429_v29, 0.0  ;;  %v1470_v21 = vsel %vm1446_vm10, %v1428_v20, 0.0 }
 0x25d   : > { %v1451_v62 = vsel %vm1447_vm9, %v1409_v47, 0.0  ;;  %v1450_v3 = vsel %vm1446_vm10, %v1408_v7, 0.0  ;;  %v1380_v7 = vadd.f32 %v4150_v38, %v3948_v61 }
 0x25e   : > { %v1632_v32 = vpop.permute.xlu1 %1631  ;;  %v1630_v34 = vpop.permute.xlu0 %1629 }
 0x25f   : > { %v1727_v45 = vsel %vm1725_vm11, %v1449_v57, %v1632_v32  ;;  %v1726_v58 = vsel %vm1725_vm11, %v1448_v35, %v1630_v34  ;;  %v1431_v32 = vmax.f32 %v1399_v6, 0.0  ;;  %v1430_v34 = vmax.f32 %v1398_v39, 0.0 }
 0x260   : > { %v1760_v52 = vsel %vm1758_vm12, %v1727_v45, -inf  ;;  %v1759_v31 = vsel %vm1758_vm12, %v1726_v58, -inf  ;;  %v1410_v45 = vmax.f32 %v1378_v0, 0.0 }
 0x261   : > { %v1761_v46 = vmax.f32 %v1759_v31, %v1760_v52  ;;  %v1473_v58 = vsel %vm1447_vm9, %v1431_v32, 0.0  ;;  %v1400_v52 = vadd.f32 %v4150_v38, %v3917_v51  ;;  %v1472_v36 = vsel %vm1446_vm10, %v1430_v34, 0.0 }
 0x262   : > { %v1676_v11 = vpop.permute.xlu1 %1675  ;;  %v1674_v17 = vpop.permute.xlu0 %1673 }
 0x263   : > { %v1762_v22 = vrot.slane %v1761_v46, 4  ;;  %v1749_v19 = vsel %vm1725_vm11, %v1471_v60, %v1676_v11  ;;  %v1748_v50 = vsel %vm1725_vm11, %v1470_v21, %v1674_v17  ;;  %v1411_v60 = vmax.f32 %v1379_v25, 0.0 }
 0x264   : > { %v1859_v16 = vsel %vm1758_vm12, %v1749_v19, -inf  ;;  %v1858_v63 = vsel %vm1758_vm12, %v1748_v50, -inf  ;;  %v1401_v11 = vadd.f32 %v4150_v38, %v3925_v24  ;;  %v1381_v50 = vadd.f32 %v4150_v38, %v3953_v28 }
 0x265   : > { %v1763_v15 = vmax.f32 %v1761_v46, %v1762_v22  ;;  %v4206_v26 = vmax.f32 %v1858_v63, %v1859_v16  ;;  %v1453_v47 = vsel %vm1447_vm9, %v1411_v60, 0.0  ;;  %v1452_v16 = vsel %vm1446_vm10, %v1410_v45, 0.0 }
 0x266   : > { %v1636_v42 = vpop.permute.xlu1 %1635  ;;  %v1634_v40 = vpop.permute.xlu0 %1633  ;;  %v1432_v0 = vmax.f32 %v1400_v52, 0.0  ;;  %v1413_v32 = vmax.f32 %v1381_v50, 0.0 }
 0x267   : > { %v1729_v48 = vsel %vm1725_vm11, %v1451_v62, %v1636_v42  ;;  %v1728_v57 = vsel %vm1725_vm11, %v1450_v3, %v1634_v40  ;;  %v1764_v20 = vrot.slane %v1763_v15, 2  ;;  %v1433_v62 = vmax.f32 %v1401_v11, 0.0 }
 0x268   : > { %v1769_v35 = vsel %vm1758_vm12, %v1729_v48, -inf  ;;  %v1768_v1 = vsel %vm1758_vm12, %v1728_v57, -inf  ;;  %v1412_v57 = vmax.f32 %v1380_v7, 0.0  ;;  %v1383_v11 = vadd.f32 %v4150_v38, %v4023_v41 }
 0x269   : > { %v1770_v12 = vmax.f32 %v1768_v1, %v1769_v35  ;;  %v1765_v22 = vmax.f32 %v1763_v15, %v1764_v20  ;;  %v1475_v25 = vsel %vm1447_vm9, %v1433_v62, 0.0  ;;  %v1474_v1 = vsel %vm1446_vm10, %v1432_v0, 0.0 }
 0x26a   : > { %v1680_v29 = vpop.permute.xlu1 %1679  ;;  %v1678_v9 = vpop.permute.xlu0 %1677 }
 0x26b   : > { %v1771_v31 = vrot.slane %v1770_v12, 4  ;;  %v1751_v46 = vsel %vm1725_vm11, %v1473_v58, %v1680_v29  ;;  %v1750_v17 = vsel %vm1725_vm11, %v1472_v36, %v1678_v9  ;;  %v1766_v3 = vrot.slane %v1765_v22, 1 }
 0x26c   : > { %v1868_v21 = vsel %vm1758_vm12, %v1751_v46, -inf  ;;  %v1867_v51 = vsel %vm1758_vm12, %v1750_v17, -inf  ;;  %v1382_v29 = vadd.f32 %v4150_v38, %v3994_v53 }
 0x26d   : > { %v1772_v19 = vmax.f32 %v1770_v12, %v1771_v31  ;;  %v4236_v6 = vmax.f32 %v1867_v51, %v1868_v21  ;;  %v1767_v31 = vmax.f32 %v1765_v22, %v1766_v3  ;;  %v1455_v21 = vsel %vm1447_vm9, %v1413_v32, 0.0 }
 0x26e   : > { %v1640_v24 = vpop.permute.xlu1 %1639  ;;  %v1638_v63 = vpop.permute.xlu0 %1637  ;;  %v1454_v22 = vsel %vm1446_vm10, %v1412_v57, 0.0 }
 0x26f   : > { %v1773_v39 = vrot.slane %v1772_v19, 2  ;;  %v1731_v61 = vsel %vm1725_vm11, %v1453_v47, %v1640_v24  ;;  %v1730_v15 = vsel %vm1725_vm11, %v1452_v16, %v1638_v63  ;;  %v1414_v24 = vmax.f32 %v1382_v29, 0.0 }
 0x270   : > { %v1778_v42 = vsel %vm1758_vm12, %v1731_v61, -inf  ;;  %v1777_v28 = vsel %vm1758_vm12, %v1730_v15, -inf  ;;  %v1415_v61 = vmax.f32 %v1383_v11, 0.0 }
 0x271   : > { %v1774_v40 = vmax.f32 %v1772_v19, %v1773_v39  ;;  %v1779_v48 = vmax.f32 %v1777_v28, %v1778_v42  ;;  %v1456_v0 = vsel %vm1446_vm10, %v1414_v24, 0.0 }
 0x272   : > { %v1684_v35 = vpop.permute.xlu1 %1683  ;;  %v1682_v34 = vpop.permute.xlu0 %1681  ;;  %v1457_v3 = vsel %vm1447_vm9, %v1415_v61, 0.0  ;;  %v1387_v61 = vadd.f32 %v4150_v38, %v4052_v14 }
 0x273   : > { %v1775_v20 = vrot.slane %v1774_v40, 1  ;;  %v1780_v12 = vrot.slane %v1779_v48, 4  ;;  %v1753_v45 = vsel %vm1725_vm11, %v1475_v25, %v1684_v35  ;;  %v1752_v58 = vsel %vm1725_vm11, %v1474_v1, %v1682_v34 }
 0x274   : > { %v1877_v9 = vsel %vm1758_vm12, %v1753_v45, -inf  ;;  %v1876_v52 = vsel %vm1758_vm12, %v1752_v58, -inf  ;;  %v1385_v58 = vadd.f32 %v4150_v38, %v4036_v8 }
 0x275   : > { %v1776_v46 = vmax.f32 %v1774_v40, %v1775_v20  ;;  %v1781_v36 = vmax.f32 %v1779_v48, %v1780_v12  ;;  %v4256_v60 = vmax.f32 %v1876_v52, %v1877_v9  ;;  %v1384_v20 = vadd.f32 %v4150_v38, %v4027_v43 }
 0x276   : > { %v1644_v17 = vpop.permute.xlu1 %1643  ;;  %v1642_v7 = vpop.permute.xlu0 %1641  ;;  %v1417_v11 = vmax.f32 %v1385_v58, 0.0 }
 0x277   : > { %v1904_v53 = vsel %vm1903_vm13, %v1767_v31, %v1776_v46  ;;  %v1782_v19 = vrot.slane %v1781_v36, 2  ;;  %v1733_v51 = vsel %vm1725_vm11, %v1455_v21, %v1644_v17  ;;  %v1732_v47 = vsel %vm1725_vm11, %v1454_v22, %v1642_v7 }
 0x278   : > { %v1787_v50 = vsel %vm1758_vm12, %v1733_v51, -inf  ;;  %v1786_v41 = vsel %vm1758_vm12, %v1732_v47, -inf  ;;  %v1416_v52 = vmax.f32 %v1384_v20, 0.0  ;;  %v1388_v20 = vadd.f32 %v4150_v38, %v4059_v30 }
 0x279   : > { %v1783_v16 = vmax.f32 %v1781_v36, %v1782_v19  ;;  %v1788_v63 = vmax.f32 %v1786_v41, %v1787_v50 }
 0x27a   : > { %v1646_v39 = vpop.permute.xlu0 %1645  ;;  %v1458_v21 = vsel %vm1446_vm10, %v1416_v52, 0.0 }
 0x27b   : > { %v1784_v15 = vrot.slane %v1783_v16, 1  ;;  %v1789_v62 = vrot.slane %v1788_v63, 4  ;;  %v1734_v42 = vsel %vm1725_vm11, %v1456_v0, %v1646_v39 }
 0x27c   : > { %v1795_v25 = vsel %vm1758_vm12, %v1734_v42, -inf }
 0x27d   : > { %v1785_v28 = vmax.f32 %v1783_v16, %v1784_v15  ;;  %v1648_v40 = vpop.permute.xlu1 %1647  ;;  %v1790_v48 = vmax.f32 %v1788_v63, %v1789_v62  ;;  %v1386_v63 = vadd.f32 %v4150_v38, %v4044_v10 }
 0x27e   : > { %v1735_v57 = vsel %vm1725_vm11, %v1457_v3, %v1648_v40 }
 0x27f   : > { %v1906_v32 = vsel %vm1905_vm14, %v1904_v53, %v1785_v28  ;;  %v1796_v35 = vsel %vm1758_vm12, %v1735_v57, -inf  ;;  %v1791_v1 = vrot.slane %v1790_v48, 2  ;;  %v1459_v53 = vsel %vm1447_vm9, %v1417_v11, 0.0 }
 0x280   : > { %v1797_v34 = vmax.f32 %v1795_v25, %v1796_v35  ;;  %v1418_v0 = vmax.f32 %v1386_v63, 0.0  ;;  %v1419_v28 = vmax.f32 %v1387_v61, 0.0 }
 0x281   : > { %v1792_v12 = vmax.f32 %v1790_v48, %v1791_v1  ;;  %v1650_v31 = vpop.permute.xlu0 %1649 }
 0x282   : > { %v1798_v45 = vrot.slane %v1797_v34, 4  ;;  %v1736_v7 = vsel %vm1725_vm11, %v1458_v21, %v1650_v31  ;;  %v1460_v3 = vsel %vm1446_vm10, %v1418_v0, 0.0  ;;  %v1461_v57 = vsel %vm1447_vm9, %v1419_v28, 0.0 }
 0x283   : > { %v1793_v29 = vrot.slane %v1792_v12, 1  ;;  %v1804_v22 = vsel %vm1758_vm12, %v1736_v7, -inf  ;;  %v1390_v21 = vadd.f32 %v4150_v38, %v4075_v33 }
 0x284   : > { %v1799_v9 = vmax.f32 %v1797_v34, %v1798_v45  ;;  %v1389_v45 = vadd.f32 %v4150_v38, %v4068_v55 }
 0x285   : > { %v1794_v46 = vmax.f32 %v1792_v12, %v1793_v29  ;;  %v1420_v29 = vmax.f32 %v1388_v20, 0.0 }
 0x286   : > { %v1800_v36 = vrot.slane %v1799_v9, 2  ;;  %v1421_v31 = vmax.f32 %v1389_v45, 0.0 }
 0x287   : > { %v1908_v43 = vsel %vm1907_vm15, %v1906_v32, %v1794_v46  ;;  %v1462_v46 = vsel %vm1446_vm10, %v1420_v29, 0.0 }
 0x288   : > { %v1801_v17 = vmax.f32 %v1799_v9, %v1800_v36  ;;  %v1463_v30 = vsel %vm1447_vm9, %v1421_v31, 0.0  ;;  %v1394_v31 = vadd.f32 %v4150_v38, %v4114_v5 }
 0x289   : > { %v1652_v8 = vpop.permute.xlu1 %1651 }
 0x28a   : > { %v1802_v19 = vrot.slane %v1801_v17, 1  ;;  %v1737_v51 = vsel %vm1725_vm11, %v1459_v53, %v1652_v8 }
 0x28b   : > { %v1805_v50 = vsel %vm1758_vm12, %v1737_v51, -inf }
 0x28c   : > { %v1803_v47 = vmax.f32 %v1801_v17, %v1802_v19  ;;  %v1806_v24 = vmax.f32 %v1804_v22, %v1805_v50  ;;  %v1422_v22 = vmax.f32 %v1390_v21, 0.0 }
 0x28e   : > { %v1807_v16 = vrot.slane %v1806_v24, 4  ;;  %v1909_v41 = vsel %vm584_vm2, %v1908_v43, %v1803_v47  ;;  %v1391_v43 = vadd.f32 %v4150_v38, %v4080_v27 }
 0x28f   : > { %v1654_v62 = vpop.permute.xlu0 %1653 }
 0x290   : > { %v1808_v39 = vmax.f32 %v1806_v24, %v1807_v16  ;;  %v1738_v48 = vsel %vm1725_vm11, %v1460_v3, %v1654_v62  ;;  %v1423_v24 = vmax.f32 %v1391_v43, 0.0  ;;  %v1464_v16 = vsel %vm1446_vm10, %v1422_v22, 0.0 }
 0x291   : > { %v1813_v14 = vsel %vm1758_vm12, %v1738_v48, -inf  ;;  %v1392_v3 = vadd.f32 %v4150_v38, %v4092_v23  ;;  %v1393_v48 = vadd.f32 %v4150_v38, %v4099_v54  ;;  %v1403_v43 = vadd.f32 %v4150_v38, %v3962_v37 }
 0x292   : > { %v1809_v15 = vrot.slane %v1808_v39, 2  ;;  %v1465_v27 = vsel %vm1447_vm9, %v1423_v24, 0.0  ;;  %v1405_v37 = vadd.f32 %v4150_v38, %v4008_v2 }
 0x294   : > { %v1810_v42 = vmax.f32 %v1808_v39, %v1809_v15 }
 0x296   : > { %v1811_v40 = vrot.slane %v1810_v42, 1 }
 0x297   : > { %v1656_v32 = vpop.permute.xlu1 %1655 }
 0x298   : > { %v1812_v10 = vmax.f32 %v1810_v42, %v1811_v40  ;;  %v1739_v25 = vsel %vm1725_vm11, %v1461_v57, %v1656_v32 }
 0x299   : > { %v1814_v35 = vsel %vm1758_vm12, %v1739_v25, -inf }
 0x29a   : > { %v1815_v1 = vmax.f32 %v1813_v14, %v1814_v35  ;;  %v1910_v34 = vsel %vm1170_vm4, %v1909_v41, %v1812_v10  ;;  %v1424_v10 = vmax.f32 %v1392_v3, 0.0  ;;  %v1425_v35 = vmax.f32 %v1393_v48, 0.0 }
 0x29b   : > { %v1658_v9 = vpop.permute.xlu0 %1657  ;;  %v1437_v3 = vmax.f32 %v1405_v37, 0.0 }
 0x29c   : > { %v1816_v12 = vrot.slane %v1815_v1, 4  ;;  %v1740_v11 = vsel %vm1725_vm11, %v1462_v46, %v1658_v9  ;;  %v1467_v20 = vsel %vm1447_vm9, %v1425_v35, 0.0 }
 0x29d   : > { %v1822_v53 = vsel %vm1758_vm12, %v1740_v11, -inf  ;;  %v1402_v11 = vadd.f32 %v4150_v38, %v4103_v4 }
 0x29e   : > { %v1817_v58 = vmax.f32 %v1815_v1, %v1816_v12  ;;  %v1466_v1 = vsel %vm1446_vm10, %v1424_v10, 0.0 }
 0x2a0   : > { %v1818_v52 = vrot.slane %v1817_v58, 2 }
 0x2a2   : > { %v1819_v36 = vmax.f32 %v1817_v58, %v1818_v52 }
 0x2a3   : > { %v1660_v17 = vpop.permute.xlu1 %1659 }
 0x2a4   : > { %v1820_v7 = vrot.slane %v1819_v36, 1  ;;  %v1741_v55 = vsel %vm1725_vm11, %v1463_v30, %v1660_v17  ;;  %v1426_v17 = vmax.f32 %v1394_v31, 0.0 }
 0x2a5   : > { %v1823_v8 = vsel %vm1758_vm12, %v1741_v55, -inf }
 0x2a6   : > { %v1821_v19 = vmax.f32 %v1819_v36, %v1820_v7  ;;  %v1824_v51 = vmax.f32 %v1822_v53, %v1823_v8  ;;  %v1395_v36 = vadd.f32 %v4150_v38, %v4122_v44  ;;  %v1861_v7 = vrot.slane %v4206_v26, 4 }
 0x2a7   : > { %v1662_v50 = vpop.permute.xlu0 %1661  ;;  %v1870_v53 = vrot.slane %v4236_v6, 4  ;;  %v1468_v44 = vsel %vm1446_vm10, %v1426_v17, 0.0 }
 0x2a8   : > { %v1825_v47 = vrot.slane %v1824_v51, 4  ;;  %v1911_v33 = vsel %vm976_vm5, %v1910_v34, %v1821_v19  ;;  %v1742_v63 = vsel %vm1725_vm11, %v1464_v16, %v1662_v50  ;;  %v2688_v34 = vld [vmem:[%s4526_s4 + $0x3] ss:$0 sm:$0xff]  ;;  %v1427_v5 = vmax.f32 %v1395_v36, 0.0 }
 0x2a9   : > { %v1831_v0 = vsel %vm1758_vm12, %v1742_v63, -inf  ;;  %v1879_v19 = vrot.slane %v4256_v60, 4  ;;  %v1435_v63 = vmax.f32 %v1403_v43, 0.0 }
 0x2aa   : > { %v1826_v41 = vmax.f32 %v1824_v51, %v1825_v47  ;;  %v1434_v51 = vmax.f32 %v1402_v11, 0.0  ;;  %v1404_v47 = vadd.f32 %v4150_v38, %v3987_v49  ;;  %v1469_v24 = vsel %vm1447_vm9, %v1427_v5, 0.0 }
 0x2ab   : > { %v1664_v39 = vpop.permute.xlu1 %1663 }
 0x2ac   : > { %v1827_v61 = vrot.slane %v1826_v41, 2  ;;  %v1743_v15 = vsel %vm1725_vm11, %v1465_v27, %v1664_v39  ;;  %v1871_v27 = vmax.f32 %v4236_v6, %v1870_v53  ;;  %v1476_v2 = vsel %vm1446_vm10, %v1434_v51, 0.0 }
 0x2ad   : > { %v1832_v62 = vsel %vm1758_vm12, %v1743_v15, -inf  ;;  %v1880_v15 = vmax.f32 %v4256_v60, %v1879_v19 }
 0x2ae   : > { %v1828_v42 = vmax.f32 %v1826_v41, %v1827_v61  ;;  %v1833_v28 = vmax.f32 %v1831_v0, %v1832_v62 }
 0x2af   : > { %v1881_v35 = vrot.slane %v1880_v15, 2 }
 0x2b0   : > { %v1829_v40 = vrot.slane %v1828_v42, 1  ;;  %v1834_v57 = vrot.slane %v1833_v28, 4 }
 0x2b1   : > { %v1882_v36 = vmax.f32 %v1880_v15, %v1881_v35 }
 0x2b2   : > { %v1830_v32 = vmax.f32 %v1828_v42, %v1829_v40  ;;  %v1835_v23 = vmax.f32 %v1833_v28, %v1834_v57  ;;  %v1436_v28 = vmax.f32 %v1404_v47, 0.0  ;;  %v1477_v40 = vsel %vm1447_vm9, %v1435_v63, 0.0 }
 0x2b3   : > { %v1666_v25 = vpop.permute.xlu0 %1665  ;;  %v1872_v57 = vrot.slane %v1871_v27, 2 }
 0x2b4   : > { %v4335_v14 = vsel %vm782_vm3, %v1911_v33, %v1830_v32  ;;  %v1744_v54 = vsel %vm1725_vm11, %v1466_v1, %v1666_v25  ;;  %v1836_v9 = vrot.slane %v1835_v23, 2  ;;  %v1862_v33 = vmax.f32 %v4206_v26, %v1861_v7 }
 0x2b5   : > { %1922 = vrot.lane.b32.xlu0 %v4335_v14, %s2979_s11  ;;  %2762 = vmatprep.mubr.msk.f32.mxu1 %vm1725_vm11, %v4335_v14  ;;  %v1840_v58 = vsel %vm1758_vm12, %v1744_v54, -inf  ;;  %v1478_v54 = vsel %vm1446_vm10, %v1436_v28, 0.0 }
 0x2b6   : > { %v1837_v21 = vmax.f32 %v1835_v23, %v1836_v9  ;;  %v1863_v6 = vrot.slane %v1862_v33, 2  ;;  %v1873_v9 = vmax.f32 %v1871_v27, %v1872_v57 }
 0x2b7   : > { %v1668_v12 = vpop.permute.xlu1 %1667 }
 0x2b8   : > { %v1745_v45 = vsel %vm1725_vm11, %v1467_v20, %v1668_v12  ;;  %v1838_v4 = vrot.slane %v1837_v21, 1 }
 0x2b9   : > { %v1841_v29 = vsel %vm1758_vm12, %v1745_v45, -inf  ;;  %2040 = vrot.lane.b32.xlu0 %v2688_v34, %s2983_s26  ;;  %v1864_v45 = vmax.f32 %v1862_v33, %v1863_v6 }
 0x2ba   : > { %v1842_v52 = vmax.f32 %v1840_v58, %v1841_v29  ;;  %v1839_v38 = vmax.f32 %v1837_v21, %v1838_v4  ;;  %v1479_v58 = vsel %vm1447_vm9, %v1437_v3, 0.0 }
 0x2bb   : > { %v1865_v7 = vrot.slane %v1864_v45, 1 }
 0x2bc   : > { %v1843_v46 = vrot.slane %v1842_v52, 4 }
 0x2bd   : > { %v1866_v51 = vmax.f32 %v1864_v45, %v1865_v7 }
 0x2be   : > { %v1844_v30 = vmax.f32 %v1842_v52, %v1843_v46 }
 0x2bf   : > { %v1670_v55 = vpop.permute.xlu0 %1669 }
 0x2c0   : > { %v1845_v8 = vrot.slane %v1844_v30, 2  ;;  %v1746_v50 = vsel %vm1725_vm11, %v1468_v44, %v1670_v55  ;;  %v1874_v55 = vrot.slane %v1873_v9, 1 }
 0x2c1   : > { %v1849_v49 = vsel %vm1758_vm12, %v1746_v50, -inf }
 0x2c2   : > { %v1846_v22 = vmax.f32 %v1844_v30, %v1845_v8  ;;  %v1883_v8 = vrot.slane %v1882_v36, 1  ;;  %v1875_v4 = vmax.f32 %v1873_v9, %v1874_v55 }
 0x2c3   : > { %v1672_v16 = vpop.permute.xlu1 %1671  ;;  %v1686_v41 = vpop.permute.xlu0 %1685 }
 0x2c4   : > { %v1847_v39 = vrot.slane %v1846_v22, 1  ;;  %v1747_v61 = vsel %vm1725_vm11, %v1469_v24, %v1672_v16  ;;  %v1754_v42 = vsel %vm1725_vm11, %v1476_v2, %v1686_v41  ;;  %v1884_v37 = vmax.f32 %v1882_v36, %v1883_v8 }
 0x2c5   : > { %v1850_v0 = vsel %vm1758_vm12, %v1747_v61, -inf  ;;  %v1885_v1 = vsel %vm1758_vm12, %v1754_v42, -inf  ;;  %v4634_v2 = vlaneseq  ;;  %v4635_v42 = vld [vmem:[#allocation2_spill] sm:$0xff]  ;;  %v2073_v8 = vadd.s32 1, %v4607_v56 }
 0x2c6   : > { %v1848_v26 = vmax.f32 %v1846_v22, %v1847_v39  ;;  %v1851_v62 = vmax.f32 %v1849_v49, %v1850_v0  ;;  %v2047_v28 = vadd.s32 16, %v4635_v42 }
 0x2c7   : > { %v1688_v48 = vpop.permute.xlu1 %1687  ;;  %v1690_v60 = vpop.permute.xlu0 %1689 }
 0x2c8   : > { %v1913_v32 = vsel %vm1903_vm13, %v1839_v38, %v1848_v26  ;;  %v1852_v10 = vrot.slane %v1851_v62, 4  ;;  %v1755_v25 = vsel %vm1725_vm11, %v1477_v40, %v1688_v48  ;;  %v1756_v12 = vsel %vm1725_vm11, %v1478_v54, %v1690_v60 }
 0x2c9   : > { %v1886_v23 = vsel %vm1758_vm12, %v1755_v25, -inf  ;;  %v1894_v11 = vsel %vm1758_vm12, %v1756_v12, -inf  ;;  %v4417_v38 = vand.u32 127, %v4634_v2  ;;  %v2984_v40 = vmov 1.0|1.0  }
 0x2ca   : > { %v1853_v34 = vmax.f32 %v1851_v62, %v1852_v10  ;;  %v1887_v20 = vmax.f32 %v1885_v1, %v1886_v23  ;;  %v2687_v25 = vld [vmem:[%s4526_s4 + $0x2] ss:$0 sm:$0xff] }
 0x2cb   : > { %v1692_v29 = vpop.permute.xlu1 %1691  ;;  %v2050_v26 = vmul.u32 2, %v4417_v38  ;;  %v2054_v62 = vadd.s32 1, %v4417_v38 }
 0x2cc   : > { %v1854_v52 = vrot.slane %v1853_v34, 2  ;;  %v1888_v31 = vrot.slane %v1887_v20, 4  ;;  %v1757_v46 = vsel %vm1725_vm11, %v1479_v58, %v1692_v29 }
 0x2cd   : > { %v1895_v18 = vsel %vm1758_vm12, %v1757_v46, -inf  ;;  %vm2051_vm0 = vcmp.ge.s32.totalorder %v4635_v42, %v2050_v26  ;;  %v2055_v3 = vmul.u32 2, %v2054_v62  ;;  %vm2052_vm1 = vcmp.ge.s32.totalorder %v4607_v56, %v2050_v26 }
 0x2ce   : > { %v1855_v21 = vmax.f32 %v1853_v34, %v1854_v52  ;;  %v1889_v30 = vmax.f32 %v1887_v20, %v1888_v31  ;;  %v1896_v17 = vmax.f32 %v1894_v11, %v1895_v18  ;;  %vm2053_vm6 = vcmp.ge.s32.totalorder %v2047_v28, %v2050_v26 }
 0x2cf   : > { %vm2058_vm7 = vcmp.lt.s32.totalorder %v2047_v28, %v2055_v3 }
 0x2d0   : > { %v1856_v43 = vrot.slane %v1855_v21, 1  ;;  %v1890_v53 = vrot.slane %v1889_v30, 2  ;;  %v1897_v13 = vrot.slane %v1896_v17, 4  ;;  %vm2061_vm10 = vmand %vm2053_vm6, %vm2058_vm7 }
 0x2d1   : > { %v2691_v60 = vsel %vm2061_vm10, 1.0, %v2982_v59 }
 0x2d2   : > { %v1857_v5 = vmax.f32 %v1855_v21, %v1856_v43  ;;  %v1891_v19 = vmax.f32 %v1889_v30, %v1890_v53  ;;  %v1898_v44 = vmax.f32 %v1896_v17, %v1897_v13  ;;  %v2068_v43 = vmul.u32 2, %v4635_v42 }
 0x2d3   : > { %v2069_v53 = vmul.u32 2, %v4607_v56  ;;  %v2072_v13 = vadd.s32 1, %v4635_v42 }
 0x2d4   : > { %v1914_v22 = vsel %vm1905_vm14, %v1913_v32, %v1857_v5  ;;  %v1892_v50 = vrot.slane %v1891_v19, 1  ;;  %v1899_v47 = vrot.slane %v1898_v44, 2 }
 0x2d5   : > { %v1915_v33 = vsel %vm1907_vm15, %v1914_v22, %v1866_v51  ;;  %v2074_v5 = vmul.u32 2, %v2072_v13  ;;  %vm2071_vm13 = vcmp.ge.s32.totalorder %v4417_v38, %v2069_v53  ;;  %v2985_v51 = vmov 1.0  }
 0x2d6   : > { %v1893_v24 = vmax.f32 %v1891_v19, %v1892_v50  ;;  %v1900_v16 = vmax.f32 %v1898_v44, %v1899_v47  ;;  %v1916_v41 = vsel %vm584_vm2, %v1915_v33, %v1875_v4  ;;  %v2075_v19 = vmul.u32 2, %v2073_v8 }
 0x2d7   : > { %v1917_v63 = vsel %vm1170_vm4, %v1916_v41, %v1884_v37  ;;  %vm2057_vm4 = vcmp.lt.s32.totalorder %v4607_v56, %v2055_v3  ;;  %vm2076_vm15 = vcmp.lt.s32.totalorder %v4417_v38, %v2074_v5 }
 0x2d8   : > { %v1901_v27 = vrot.slane %v1900_v16, 1  ;;  %v1918_v39 = vsel %vm976_vm5, %v1917_v63, %v1893_v24  ;;  %vm2060_vm8 = vmand %vm2052_vm1, %vm2057_vm4 }
 0x2da   : > { %v1902_v61 = vmax.f32 %v1900_v16, %v1901_v27 }
 0x2dc   : > { %v4402_v15 = vsel %vm782_vm3, %v1918_v39, %v1902_v61  ;;  %vm2056_vm3 = vcmp.lt.s32.totalorder %v4635_v42, %v2055_v3 }
 0x2dd   : > { %1924 = vrot.lane.b32.xlu1 %v4402_v15, %s2979_s11  ;;  %2763 = vmatmul.mubr.msk.f32.vlgmr.msra.gmra.mrb[20].mxu1 %vm1725_vm11, %v4402_v15  ;;  %vm2059_vm5 = vmand %vm2051_vm0, %vm2056_vm3  ;;  %vm2077_vm0 = vcmp.lt.s32.totalorder %v4417_v38, %v2075_v19 }
 0x2de   : > { %vm2819_vm9 = vmpackc.low %vm2060_vm8, %vm2059_vm5 }
 0x2df   : > { %2820 = vmatprep.subr.msk.bf16.mxu1 %vm2819_vm9, %v2984_v40  ;;  %vm2079_vm3 = vmand %vm2071_vm13, %vm2077_vm0 }
 0x2e0   : > { %2822 = vmatpush3.bf16.msk.msra.mxu1 %vm2819_vm9, %v2984_v40  ;;  %v2693_v44 = vsel %vm2079_vm3, 1.0, %v2982_v59 }
 0x2e1   : > { %2772 = vmatprep.subr.msk.mxu1 %vm584_vm2, %v2691_v60  ;;  %v2823_v4 = vpack.c.bf16 %v2693_v44, %v2985_v51 }
 0x2e4   : > { %2773 = vmatpush3.msk.msra.mxu1 %vm584_vm2, %v2691_v60  ;;  %vm2070_vm2 = vcmp.ge.s32.totalorder %v4417_v38, %v2068_v43 }
 0x2e5   : > { %vm2078_vm1 = vmand %vm2070_vm2, %vm2076_vm15 }
 0x2e6   : > { %vm2824_vm4 = vmpackc.low %vm1905_vm14, %vm2078_vm1  ;;  %vm2296_vm14 = vcmask 80896  }
 0x2e7   : > { %2825 = vmatprep.subr.msk.bf16.mxu1 %vm2824_vm4, %v2823_v4 }
 0x327   : > { %v4408_v49 = vpop.permute.xlu0 %1922 }
 0x328   : > { %2765 = vmatprep.mubr.msk.f32.mxu1 %vm1725_vm11, %v4408_v49 }
 0x32b   : > { %v2041_v6 = vpop.permute.xlu0 %2040 }
 0x34f   : > { %v4412_v0 = vpop.permute.xlu1 %1924 }
 0x350   : > { %2766 = vmatmul.mubr.msk.f32.gmra.mrb[22].mxu1 %vm1725_vm11, %v4412_v0 }
 0x3b0   : > { %v2764_v48 = vpop.f32.mrb[20].mxu1 }
 0x3b1   : > { %v2044_v57 = vadd.f32 %v2764_v48, %v2041_v6  ;;  %v2006_v32 = vpop.f32.mrb[21].mxu1  ;;  %v2031_v12 = vadd.f32 %v2764_v48, %v2687_v25 }
 0x3b2   : > { %v2043_v10 = vadd.f32 %v2041_v6, %v2006_v32  ;;  %v2030_v54 = vadd.f32 %v2687_v25, %v2006_v32 }
 0x3b3   : > { %2088 = vrot.lane.b32.xlu0 %v2044_v57, %s2979_s11 }
 0x3b4   : > { %2086 = vrot.lane.b32.xlu1 %v2043_v10, %s2979_s11 }
 0x423   : > { %v2767_v35 = vpop.f32.mrb[22].mxu1 }
 0x424   : > { %v2046_v1 = vadd.f32 %v2767_v35, %v2041_v6  ;;  %v2016_v23 = vpop.f32.mrb[23].mxu1  ;;  %v2033_v36 = vadd.f32 %v2767_v35, %v2687_v25 }
 0x425   : > { %v2045_v34 = vadd.f32 %v2041_v6, %v2016_v23  ;;  %v4434_v20 = vpop.permute.xlu0 %2088  ;;  %v2032_v9 = vadd.f32 %v2687_v25, %v2016_v23 }
 0x426   : > { %2098 = vrot.lane.b32.xlu0 %v2046_v1, %s2979_s11  ;;  %v4437_v45 = vpop.permute.xlu1 %2086  ;;  %v2093_v29 = vmul.f32 %v4434_v20, %v2031_v12  ;;  %v2105_v21 = vmul.f32 %v4434_v20, %v2033_v36 }
 0x427   : > { %v2092_v58 = vmul.f32 %v4437_v45, %v2030_v54  ;;  %2096 = vrot.lane.b32.xlu1 %v2045_v34, %s2979_s11  ;;  %v2104_v18 = vmul.f32 %v4437_v45, %v2032_v9 }
 0x429   : > { %2774 = vmatprep.mubr.msk.f32.mxu1 %vm1725_vm11, %v2092_v58 }
 0x42a   : > { %2775 = vmatmul.mubr.msk.f32.vlgmr.msra.gmra.mrb[24].mxu1 %vm1725_vm11, %v2093_v29 }
 0x42b   : > { %2828 = vmatpush3.bf16.msk.msra.mxu1 %vm2824_vm4, %v2823_v4 }
 0x498   : > { %v4444_v52 = vpop.permute.xlu0 %2098 }
 0x499   : > { %v4446_v31 = vpop.permute.xlu1 %2096  ;;  %v2103_v11 = vmul.f32 %v4444_v52, %v2031_v12  ;;  %v2107_v17 = vmul.f32 %v4444_v52, %v2033_v36 }
 0x49a   : > { %v2102_v46 = vmul.f32 %v4446_v31, %v2030_v54  ;;  %v2106_v30 = vmul.f32 %v4446_v31, %v2032_v9 }
 0x49c   : > { %2777 = vmatprep.mubr.msk.f32.mxu1 %vm1725_vm11, %v2102_v46 }
 0x49d   : > { %2778 = vmatmul.mubr.msk.f32.gmra.mrb[26].mxu1 %vm1725_vm11, %v2103_v11 }
 0x49e   : > { %2780 = vmatprep.mubr.msk.f32.mxu1 %vm1725_vm11, %v2104_v18 }
 0x4a1   : > { %2781 = vmatmul.mubr.msk.f32.gmra.mrb[28].mxu1 %vm1725_vm11, %v2105_v21 }
 0x4a2   : > { %2783 = vmatprep.mubr.msk.f32.mxu1 %vm1725_vm11, %v2106_v30 }
 0x4a5   : > { %2784 = vmatmul.mubr.msk.f32.gmra.mrb[30].mxu1 %vm1725_vm11, %v2107_v17 }
 0x4fd   : > { %v2776_v7 = vpop.f32.mrb[24].mxu1 }
 0x4fe   : > { %v2201_v55 = vpop.f32.mrb[25].mxu1  ;;  %v2241_v22 = vmul.f32 0.2236068, %v2776_v7 }
 0x4ff   : > { %v2240_v37 = vmul.f32 0.2236068, %v2201_v55 }
 0x570   : > { %v2779_v56 = vpop.f32.mrb[26].mxu1 }
 0x571   : > { %v2243_v50 = vmul.f32 0.2236068, %v2779_v56  ;;  %v2211_v47 = vpop.f32.mrb[27].mxu1 }
 0x572   : > { %v2242_v33 = vmul.f32 0.2236068, %v2211_v47  ;;  %v2458_v47 = vld [vmem:[%s4525_s3 + $0x8] sm:$0xff] }
 0x573   : > { %v2249_v24 = vmax.f32 %v2241_v22, %v2243_v50 }
 0x574   : > { %v2248_v16 = vmax.f32 %v2240_v37, %v2242_v33  ;;  %v2782_v41 = vpop.f32.mrb[28].mxu1 }
 0x575   : > { %v2251_v63 = vsub.f32 %v2241_v22, %v2249_v24  ;;  %v2257_v27 = vsub.f32 %v2243_v50, %v2249_v24  ;;  %v2221_v39 = vpop.f32.mrb[29].mxu1  ;;  %v2245_v28 = vmul.f32 0.2236068, %v2782_v41  ;;  %v2457_v50 = vld [vmem:[%s4525_s3] sm:$0xff]  ;;  %v2460_v24 = vld [vmem:[%s4525_s3 + $0x18] sm:$0xff] }
 0x576   : > { %v2250_v61 = vsub.f32 %v2240_v37, %v2248_v16  ;;  %v2256_v59 = vsub.f32 %v2242_v33, %v2248_v16  ;;  %v2244_v40 = vmul.f32 0.2236068, %v2221_v39  ;;  %v2459_v37 = vld [vmem:[%s4525_s3 + $0x10] sm:$0xff]  ;;  %v2829_v33 = vpack.c.bf16 %v2458_v47, %v2457_v50  ;;  %v2461_v41 = vld [vmem:[%s4525_s3 + $0x20] sm:$0xff] }
 0x577   : > { %v2254_v2 = vmul.f32 1.442695, %v2251_v63  ;;  %v2260_v38 = vmul.f32 1.442695, %v2257_v27  ;;  %v2833_v16 = vpack.c.bf16 %v2460_v24, %v2459_v37 }
 0x578   : > { %v2252_v26 = vmul.f32 1.442695, %v2250_v61  ;;  %v2258_v62 = vmul.f32 1.442695, %v2256_v59  ;;  %v2785_v42 = vpop.f32.mrb[30].mxu1  ;;  %2830 = vmatprep.subr.bf16.mxu1 %v2829_v33 }
 0x579   : > { %2944 = vpow2.f32 %v2254_v2  ;;  %v2247_v3 = vmul.f32 0.2236068, %v2785_v42  ;;  %v2231_v6 = vpop.f32.mrb[31].mxu1 }
 0x57a   : > { %2946 = vpow2.f32 %v2260_v38  ;;  %v2246_v48 = vmul.f32 0.2236068, %v2231_v6 }
 0x57b   : > { %2948 = vpow2.f32 %v2252_v26  ;;  %v2273_v60 = vmax.f32 %v2245_v28, %v2247_v3 }
 0x57c   : > { %2950 = vpow2.f32 %v2258_v62  ;;  %v2272_v57 = vmax.f32 %v2244_v40, %v2246_v48 }
 0x57d   : > { %v2275_v32 = vsub.f32 %v2245_v28, %v2273_v60  ;;  %v2281_v10 = vsub.f32 %v2247_v3, %v2273_v60 }
 0x57e   : > { %v2274_v25 = vsub.f32 %v2244_v40, %v2272_v57  ;;  %v2280_v35 = vsub.f32 %v2246_v48, %v2272_v57 }
 0x57f   : > { %v2278_v1 = vmul.f32 1.442695, %v2275_v32  ;;  %v2284_v23 = vmul.f32 1.442695, %v2281_v10 }
 0x580   : > { %v2276_v54 = vmul.f32 1.442695, %v2274_v25  ;;  %v2282_v34 = vmul.f32 1.442695, %v2280_v35 }
 0x581   : > { %2952 = vpow2.f32 %v2278_v1 }
 0x582   : > { %2954 = vpow2.f32 %v2284_v23 }
 0x583   : > { %v2945_v12 = vpop.eup %2944  ;;  %2956 = vpow2.f32 %v2276_v54 }
 0x584   : > { %v2947_v58 = vpop.eup %2946  ;;  %2958 = vpow2.f32 %v2282_v34 }
 0x585   : > { %v2949_v29 = vpop.eup %2948  ;;  %v2263_v9 = vadd.f32 %v2947_v58, %v2945_v12 }
 0x586   : > { %v2951_v46 = vpop.eup %2950 }
 0x587   : > { %2960 = vrcp.f32 %v2263_v9  ;;  %v2262_v36 = vadd.f32 %v2951_v46, %v2949_v29 }
 0x589   : > { %2962 = vrcp.f32 %v2262_v36 }
 0x58b   : > { %v2953_v11 = vpop.eup %2952 }
 0x58c   : > { %v2955_v18 = vpop.eup %2954 }
 0x58d   : > { %v2957_v21 = vpop.eup %2956  ;;  %v2287_v30 = vadd.f32 %v2955_v18, %v2953_v11 }
 0x58e   : > { %v2959_v17 = vpop.eup %2958 }
 0x58f   : > { %2964 = vrcp.f32 %v2287_v30  ;;  %v2286_v7 = vadd.f32 %v2959_v17, %v2957_v21 }
 0x591   : > { %v2961_v55 = vpop.eup %2960  ;;  %2966 = vrcp.f32 %v2286_v7 }
 0x592   : > { %v2269_v43 = vmul.f32 %v2961_v55, %v2945_v12  ;;  %v2271_v53 = vmul.f32 %v2961_v55, %v2947_v58 }
 0x593   : > { %v2963_v13 = vpop.eup %2962 }
 0x594   : > { %v2268_v8 = vmul.f32 %v2963_v13, %v2949_v29  ;;  %v2270_v5 = vmul.f32 %v2963_v13, %v2951_v46 }
 0x596   : > { %2790 = vmatprep.mubr.msk.f32.mxu1 %vm2296_vm14, %v2268_v8 }
 0x597   : > { %2791 = vmatmul.mubr.msk.f32.vlgmr.msra.gmra.mrb[32].mxu1 %vm2296_vm14, %v2269_v43 }
 0x598   : > { %2793 = vmatprep.mubr.msk.f32.mxu1 %vm2296_vm14, %v2270_v5  ;;  %2832 = vmatpush3.bf16.msra.mxu1 %v2829_v33 }
 0x599   : > { %v2965_v19 = vpop.eup %2964  ;;  %2834 = vmatprep.subr.bf16.mxu1 %v2833_v16 }
 0x59a   : > { %v2293_v44 = vmul.f32 %v2965_v19, %v2953_v11  ;;  %v2295_v51 = vmul.f32 %v2965_v19, %v2955_v18 }
 0x59b   : > { %v2967_v4 = vpop.eup %2966  ;;  %2794 = vmatmul.mubr.msk.f32.gmra.mrb[34].mxu1 %vm2296_vm14, %v2271_v53 }
 0x59c   : > { %v2292_v56 = vmul.f32 %v2967_v4, %v2957_v21  ;;  %v2294_v22 = vmul.f32 %v2967_v4, %v2959_v17  ;;  %2836 = vmatpush3.bf16.msra.mxu1 %v2833_v16 }
 0x59d   : > { %2810 = vmatprep.subr.mxu1 %v2461_v41 }
 0x59e   : > { %2796 = vmatprep.mubr.msk.f32.mxu1 %vm2296_vm14, %v2292_v56 }
 0x59f   : > { %2797 = vmatmul.mubr.msk.f32.gmra.mrb[36].mxu1 %vm2296_vm14, %v2293_v44 }
 0x5a0   : > { %2799 = vmatprep.mubr.msk.f32.mxu1 %vm2296_vm14, %v2294_v22  ;;  %2811 = vmatpush3.msra.mxu1 %v2461_v41 }
 0x5a3   : > { %2800 = vmatmul.mubr.msk.f32.gmra.mrb[38].mxu1 %vm2296_vm14, %v2295_v51 }
 0x66a   : > { %v2792_v63 = vpop.f32.mrb[32].mxu1 }
 0x66b   : > { %v2390_v27 = vpop.f32.mrb[33].mxu1  ;;  %v2430_v61 = vmul.f32 %v2792_v63, %v4434_v20 }
 0x66c   : > { %v2429_v38 = vmul.f32 %v2390_v27, %v4437_v45 }
 0x66e   : > { %v2795_v39 = vpop.f32.mrb[34].mxu1 }
 0x66f   : > { %v2432_v59 = vmul.f32 %v2795_v39, %v4444_v52  ;;  %v2400_v2 = vpop.f32.mrb[35].mxu1 }
 0x670   : > { %v2431_v26 = vmul.f32 %v2400_v2, %v4446_v31 }
 0x671   : > { %v2434_v62 = vadd.f32 %v2432_v59, %v2430_v61 }
 0x672   : > { %v2433_v42 = vadd.f32 %v2431_v26, %v2429_v38  ;;  %v2798_v28 = vpop.f32.mrb[36].mxu1 }
 0x673   : > { %v2410_v3 = vpop.f32.mrb[37].mxu1  ;;  %v2438_v40 = vmul.f32 %v2798_v28, %v4434_v20 }
 0x674   : > { %v2437_v57 = vmul.f32 %v2410_v3, %v4437_v45  ;;  %v2435_v20 = vadd.f32 %v2433_v42, %v4335_v14  ;;  %v2715_v14 = vld [vmem:[%s4527_s5] ss:$0 sm:$0xff] }
 0x676   : > { %v2801_v6 = vpop.f32.mrb[38].mxu1 }
 0x677   : > { %v2440_v48 = vmul.f32 %v2801_v6, %v4444_v52  ;;  %v2420_v60 = vpop.f32.mrb[39].mxu1  ;;  %v2436_v52 = vadd.f32 %v2434_v62, %v4402_v15 }
 0x678   : > { %v2439_v32 = vmul.f32 %v2420_v60, %v4446_v31 }
 0x679   : > { %v2442_v10 = vadd.f32 %v2440_v48, %v2438_v40 }
 0x67a   : > { %v2441_v25 = vadd.f32 %v2439_v32, %v2437_v57 }
 0x67b   : > { %v2446_v35 = vadd.f32 %v2442_v10, %v4412_v0 }
 0x67c   : > { %v2445_v1 = vadd.f32 %v2441_v25, %v4408_v49 }
 0x67d   : > { %2451 = vrot.lane.b32.xlu0 %v2446_v35, %s2983_s26 }
 0x67e   : > { %2449 = vrot.lane.b32.xlu1 %v2445_v1, %s2983_s26 }
 0x6ef   : > { %v2452_v23 = vpop.permute.xlu0 %2451 }
 0x6f0   : > { %v2450_v54 = vpop.permute.xlu1 %2449  ;;  %v2456_v31 = vsel %vm1725_vm11, %v2436_v52, %v2452_v23 }
 0x6f1   : > { %v2455_v45 = vsel %vm1725_vm11, %v2435_v20, %v2450_v54  ;;  %vm2550_vm11 = vcmask 23552  }
 0x6f2   : > { %2812 = vmatprep.mubr.msk.f32.mxu1 %vm1758_vm12, %v2455_v45 }
 0x6f3   : > { %2813 = vmatmul.mubr.msk.f32.vlgmr.msra.gmra.mrb[40].mxu1 %vm1758_vm12, %v2456_v31 }
 0x7c6   : > { %v2814_v49 = vpop.f32.mrb[40].mxu1 }
 0x7c7   : > { %v2541_v15 = vpop.f32.mrb[41].mxu1  ;;  %v2547_v34 = vadd.f32 %v2814_v49, %v2715_v14 }
 0x7c8   : > { %v2542_v0 = vadd.f32 %v2715_v14, %v2541_v15 }
 0x7c9   : > { %2552 = vst.msk [vmem:[%s256_s23 + $0x8] sm:$0xff] %vm2550_vm11, %v2547_v34 }
 0x7ca   : > { %2551 = vst.msk [vmem:[%s256_s23] sm:$0xff] %vm2550_vm11, %v2542_v0 }
 0x7cb PF: > { %s16_s21 = sadd.s32 1, %s2974_s21  }
 0x7cc   : > { %p13_p5 = scmp.ge.s32.totalorder %s16_s21, 4  }
 0x7ce   :  { %15 = sbr.rel (!%p13_p5) target bundleno = 1 (0x1), region = 74 }

</bundles_post_ra>
